<compile_context>
chip_gen: v5e
topology: v5e:2x2
jax: 0.10.0
libtpu: 0.0.40
codegen_flags: <defaults>
</compile_context>

<pallas_src>
import jax
import jax.numpy as jnp
from jax.experimental import pallas as pl
from jax.experimental.pallas import tpu as pltpu


def _make_kernel(*, T, Bp, D, H, Cp, off):
    """Build the fused 2-layer-LSTM + fc kernel for a static shape/layout."""
    H4 = 4 * H

    def kernel(x_ref, w_ref, out_ref):
        # ---- one-time weight unpack (static, 8-row-aligned slices) ----
        wih1 = w_ref[off["wih1"]:off["wih1"] + D, 0:H4]       # (D, 4H) g-cols pre-x2
        b1 = w_ref[off["b1"]:off["b1"] + 1, 0:H4]             # (1, 4H) g-cols pre-x2
        b2 = w_ref[off["b2"]:off["b2"] + 1, 0:H4]             # (1, 4H) g-cols pre-x2
        wfc = w_ref[off["wfc"]:off["wfc"] + H, 0:Cp]          # (H, Cp)
        bfc = w_ref[off["bfc"]:off["bfc"] + 1, 0:Cp]          # (1, Cp)
        r_l = w_ref[off["rl"]:off["rl"] + 2 * H, 0:H4]        # (2H, 4H)
        r_r = w_ref[off["rr"]:off["rr"] + 2 * H, 0:H4]        # (2H, 4H)
        # Fused cross-layer recurrent matrix; cast ONCE to bf16 so every
        # in-loop matmul is a single-pass bf16 MXU op (f32 accumulation).
        r = jnp.concatenate([r_l, r_r], axis=1).astype(jnp.bfloat16)   # (2H, 8H)

        # Hoisted layer-1 input projection + bias: one matmul for all T steps.
        zx1 = (jnp.dot(x_ref[...], wih1, preferred_element_type=jnp.float32)
               + b1)                                           # (T*Bp, 4H)

        # Hoist the layer-2 bias broadcast out of the unrolled loop.
        b2b = jnp.broadcast_to(b2, (Bp, H4))

        def gates(z, c):
            # Single EUP push for the z nonlinearities: g-gate columns of z were
            # pre-scaled by 2, so tanh(a) = 2*sigmoid(2a) - 1 becomes a VPU fma
            # on the one full-vreg sigmoid output. Gate order i, f, g, o.
            s = jax.nn.sigmoid(z)                              # (Bp, 4H)
            i = s[:, 0:H]
            f = s[:, H:2 * H]
            g = 2.0 * s[:, 2 * H:3 * H] - 1.0
            o = s[:, 3 * H:4 * H]
            c_new = f * c + i * g
            h_new = o * jnp.tanh(c_new)
            return h_new, c_new

        zeros = jnp.zeros((Bp, H), jnp.float32)
        # Step 0, layer 1: h1(-1) = 0, so z1(0) is just the input projection.
        h1, c1 = gates(zx1[0:Bp, :], zeros)
        h2, c2 = zeros, zeros

        # Fully unrolled (T static & tiny). Each iteration issues ONE fused
        # matmul  m = [h1(t), h2(t-1)] @ [[Whh1, Wih2], [0, Whh2]]:
        #   m[:, 0:4H]  = h1(t) @ Whh1                -> recurrent part of z1(t+1)
        #   m[:, 4H:8H] = h1(t) @ Wih2 + h2(t-1)@Whh2 -> z2(t) (minus bias)
        # The two gate blocks per iteration are independent of each other, so
        # only the matmul + one gate block sit on the serial path per step.
        for t in range(T):
            h12 = jnp.concatenate([h1, h2], axis=-1).astype(jnp.bfloat16)  # (Bp, 2H)
            m = jnp.dot(h12, r, preferred_element_type=jnp.float32)        # (Bp, 8H)
            # layer-2 cell at step t
            h2, c2 = gates(m[:, H4:2 * H4] + b2b, c2)
            # layer-1 cell at step t+1 (nothing left to do after the last step)
            if t < T - 1:
                h1, c1 = gates(m[:, 0:H4] + zx1[(t + 1) * Bp:(t + 2) * Bp, :], c1)

        # fc on output[:, -1, :] == h2(T-1). (Bp, Cp) = full-lane unmasked store.
        out_ref[...] = (jnp.dot(h2, wfc, preferred_element_type=jnp.float32)
                        + bfc)

    return kernel


def init_params(key, input_dim, hidden_dim, num_classes):
    """Deterministic synthetic parameters in PyTorch layout:
    weight_ih (4H, in), weight_hh (4H, H), biases (4H,), gate order i,f,g,o."""
    H = hidden_dim
    ks = jax.random.split(key, 10)
    s = 1.0 / jnp.sqrt(jnp.float32(H))
    u = lambda k, shape: jax.random.uniform(k, shape, jnp.float32, -s, s)
    return {
        "w_ih0": u(ks[0], (4 * H, input_dim)),
        "w_hh0": u(ks[1], (4 * H, H)),
        "b_ih0": u(ks[2], (4 * H,)),
        "b_hh0": u(ks[3], (4 * H,)),
        "w_ih1": u(ks[4], (4 * H, H)),
        "w_hh1": u(ks[5], (4 * H, H)),
        "b_ih1": u(ks[6], (4 * H,)),
        "b_hh1": u(ks[7], (4 * H,)),
        "w_fc": u(ks[8], (num_classes, H)),
        "b_fc": u(ks[9], (num_classes,)),
    }


def prepare_kernel_params(raw, input_dim, hidden_dim, num_classes):
    """One-time constant prep: transpose, cross-layer fusion, g-column x2
    scaling (tanh-via-sigmoid), padding, and packing of every weight/bias into
    a single lane-dense f32 buffer (one HBM->VMEM DMA per kernel call)."""
    D, H, C = input_dim, hidden_dim, num_classes
    H4 = 4 * H
    Cp = ((C + 127) // 128) * 128
    pack_w = max(H4, Cp)

    def scale_g(w):  # pre-scale g-gate columns by 2: tanh(a) = 2*sigmoid(2a) - 1
        return w.at[..., 2 * H:3 * H].multiply(2.0)

    wih1 = scale_g(raw["w_ih0"].T)                                    # (D, 4H)
    whh1 = scale_g(raw["w_hh0"].T)                                    # (H, 4H)
    b1 = scale_g((raw["b_ih0"] + raw["b_hh0"])[None, :])              # (1, 4H)
    wih2 = scale_g(raw["w_ih1"].T)                                    # (H, 4H)
    whh2 = scale_g(raw["w_hh1"].T)                                    # (H, 4H)
    b2 = scale_g((raw["b_ih1"] + raw["b_hh1"])[None, :])              # (1, 4H)
    wfc = jnp.pad(raw["w_fc"].T, ((0, 0), (0, Cp - C)))               # (H, Cp)
    bfc = jnp.pad(raw["b_fc"][None, :], ((0, 0), (0, Cp - C)))        # (1, Cp)

    # Fused cross-layer recurrent matrix:
    #   [h1(t), h2(t-1)] @ R = [ h1@Whh1 | h1@Wih2 + h2@Whh2 ]
    r_top = jnp.concatenate([whh1, wih2], axis=1)                     # (H, 8H)
    r_bot = jnp.concatenate([jnp.zeros((H, H4), jnp.float32), whh2], axis=1)
    r_fused = jnp.concatenate([r_top, r_bot], axis=0)                 # (2H, 8H)

    segs = [
        ("wih1", wih1),
        ("b1", b1),
        ("b2", b2),
        ("wfc", wfc),
        ("bfc", bfc),
        ("rl", r_fused[:, 0:H4]),                                     # (2H, 4H)
        ("rr", r_fused[:, H4:2 * H4]),                                # (2H, 4H)
    ]
    off, blocks, row = {}, [], 0
    for name, arr in segs:
        off[name] = row
        rp = ((arr.shape[0] + 7) // 8) * 8                            # 8-sublane align
        blocks.append(jnp.pad(arr, ((0, rp - arr.shape[0]),
                                    (0, pack_w - arr.shape[1]))))
        row += rp
    w_packed = jnp.concatenate(blocks, axis=0)                        # (rows, pack_w)

    cfg = {"D": D, "H": H, "C": C, "Cp": Cp, "off": off}
    return w_packed, cfg


def make_forward(w_packed, cfg):
    """Returns a jitted forward(a, b) -> logits, closed over the packed weights."""
    D, H, C, Cp, off = cfg["D"], cfg["H"], cfg["C"], cfg["Cp"], cfg["off"]

    @jax.jit
    def forward(a, b):
        x = jnp.concatenate([a, b], axis=2).astype(jnp.float32)       # (B, T, D)
        B, T, Dx = x.shape
        assert Dx == D
        Bp = ((B + 7) // 8) * 8                                       # full sublane tile

        x_tm = jnp.transpose(x, (1, 0, 2))                            # (T, B, D) time-major
        if Bp != B:
            x_tm = jnp.pad(x_tm, ((0, 0), (0, Bp - B), (0, 0)))
        x_flat = x_tm.reshape(T * Bp, D)                              # (T*Bp, D)

        flops = 2 * (T * Bp * D * 4 * H          # hoisted input projection
                     + T * Bp * 2 * H * 8 * H    # fused cross-layer recurrent matmuls
                     + Bp * H * Cp)              # fc
        transcendentals = 2 * T * Bp * 5 * H     # per cell: sigmoid(4H) + tanh(H)
        bytes_accessed = 4 * (x_flat.size + int(w_packed.size) + Bp * Cp)

        vmem = pl.BlockSpec(memory_space=pltpu.MemorySpace.VMEM)
        out = pl.pallas_call(
            _make_kernel(T=T, Bp=Bp, D=D, H=H, Cp=Cp, off=off),
            out_shape=jax.ShapeDtypeStruct((Bp, Cp), jnp.float32),
            in_specs=[vmem, vmem],
            out_specs=vmem,
            cost_estimate=pl.CostEstimate(flops=int(flops),
                                          transcendentals=int(transcendentals),
                                          bytes_accessed=int(bytes_accessed)),
        )(x_flat, w_packed)
        return out[:B, :C]

    return forward


def reference_forward(a, b, raw):
    """Pure-JAX f32 reference of the standard 2-layer LSTM + fc semantics."""
    x = jnp.concatenate([a, b], axis=2).astype(jnp.float32)
    B, T, D = x.shape
    H = raw["w_hh0"].shape[1]

    def cell(x_t, h, c, wih, whh, bias):
        z = x_t @ wih.T + h @ whh.T + bias
        i = jax.nn.sigmoid(z[:, 0:H])
        f = jax.nn.sigmoid(z[:, H:2 * H])
        g = jnp.tanh(z[:, 2 * H:3 * H])
        o = jax.nn.sigmoid(z[:, 3 * H:4 * H])
        c = f * c + i * g
        return o * jnp.tanh(c), c

    h1 = c1 = h2 = c2 = jnp.zeros((B, H), jnp.float32)
    for t in range(T):
        h1, c1 = cell(x[:, t, :], h1, c1, raw["w_ih0"], raw["w_hh0"],
                      raw["b_ih0"] + raw["b_hh0"])
        h2, c2 = cell(h1, h2, c2, raw["w_ih1"], raw["w_hh1"],
                      raw["b_ih1"] + raw["b_hh1"])
    return h2 @ raw["w_fc"].T + raw["b_fc"]


if __name__ == "__main__":
    # Small shapes: batch=2, seq=8, a-features=8, b-features=8 -> input_dim=16, hidden=32.
    B, T, Da, Db = 2, 8, 8, 8
    H, C = 32, 2
    D = Da + Db

    key = jax.random.PRNGKey(0)
    k_a, k_b, k_p = jax.random.split(key, 3)
    a = jax.random.normal(k_a, (B, T, Da), jnp.float32)
    b = jax.random.normal(k_b, (B, T, Db), jnp.float32)

    raw = init_params(k_p, D, H, C)
    w_packed, cfg = prepare_kernel_params(raw, D, H, C)   # one-time constant prep
    forward = make_forward(w_packed, cfg)

    logits = jax.block_until_ready(forward(a, b))
    ref = reference_forward(a, b, raw)

    assert logits.shape == (B, C)
    # bf16 recurrent path -> tolerance loosened vs the f32 reference.
    err = float(jnp.max(jnp.abs(logits - ref)))
    assert err < 2e-2, f"mismatch vs JAX reference (max abs err {err:.3e})"

    print("KERNEL_OK")
</pallas_src>

<mosaic_0001>
module attributes {stable_mosaic.version = 11 : i64} {
  func.func @kernel(%arg0: memref<64x16xf32, #tpu.memory_space<vmem>>, %arg1: memref<200x128xf32, #tpu.memory_space<vmem>>, %arg2: memref<8x128xf32, #tpu.memory_space<vmem>>) attributes {dimension_semantics = [], scalar_prefetch = 0 : i64, scratch_operands = 0 : i64, tpu.core_type = #tpu.core_type<tc>} {
    %c0 = arith.constant 0 : index
    %c0_0 = arith.constant 0 : index
    %0 = vector.load %arg1[%c0, %c0_0] : memref<200x128xf32, #tpu.memory_space<vmem>>, vector<16x128xf32>
    %c16 = arith.constant 16 : index
    %c0_1 = arith.constant 0 : index
    %1 = vector.load %arg1[%c16, %c0_1] : memref<200x128xf32, #tpu.memory_space<vmem>>, vector<1x128xf32>
    %c24 = arith.constant 24 : index
    %c0_2 = arith.constant 0 : index
    %2 = vector.load %arg1[%c24, %c0_2] : memref<200x128xf32, #tpu.memory_space<vmem>>, vector<1x128xf32>
    %c32 = arith.constant 32 : index
    %c0_3 = arith.constant 0 : index
    %3 = vector.load %arg1[%c32, %c0_3] : memref<200x128xf32, #tpu.memory_space<vmem>>, vector<32x128xf32>
    %c64 = arith.constant 64 : index
    %c0_4 = arith.constant 0 : index
    %4 = vector.load %arg1[%c64, %c0_4] : memref<200x128xf32, #tpu.memory_space<vmem>>, vector<1x128xf32>
    %c72 = arith.constant 72 : index
    %c0_5 = arith.constant 0 : index
    %5 = vector.load %arg1[%c72, %c0_5] : memref<200x128xf32, #tpu.memory_space<vmem>>, vector<64x128xf32>
    %c136 = arith.constant 136 : index
    %c0_6 = arith.constant 0 : index
    %6 = vector.load %arg1[%c136, %c0_6] : memref<200x128xf32, #tpu.memory_space<vmem>>, vector<64x128xf32>
    %7 = tpu.concatenate %5, %6 in 1 : vector<64x128xf32>, vector<64x128xf32> -> vector<64x256xf32>
    %8 = arith.truncf %7 : vector<64x256xf32> to vector<64x256xbf16>
    %c0_7 = arith.constant 0 : index
    %c0_8 = arith.constant 0 : index
    %9 = vector.load %arg0[%c0_7, %c0_8] : memref<64x16xf32, #tpu.memory_space<vmem>>, vector<64x16xf32>
    %cst = arith.constant dense<0.000000e+00> : vector<64x128xf32>
    %10 = tpu.matmul %9, %0, %cst {dimension_numbers = #tpu.dot_dimension_numbers<[1], [0], [0], [1], [0, 0, 1, 1], [], []>} : vector<64x16xf32>, vector<16x128xf32>, vector<64x128xf32> -> vector<64x128xf32>
    %11 = vector.broadcast %1 : vector<1x128xf32> to vector<64x128xf32>
    %12 = arith.addf %10, %11 : vector<64x128xf32>
    %13 = vector.shape_cast %2 : vector<1x128xf32> to vector<1x128xf32>
    %14 = vector.broadcast %13 : vector<1x128xf32> to vector<8x128xf32>
    %cst_9 = arith.constant 0.000000e+00 : f32
    %15 = vector.broadcast %cst_9 : f32 to vector<8x32xf32>
    %16 = vector.extract_strided_slice %12 {offsets = [0, 0], sizes = [8, 128], strides = [1, 1]} : vector<64x128xf32> to vector<8x128xf32>
    %17 = arith.negf %16 : vector<8x128xf32>
    %18 = math.exp %17 : vector<8x128xf32>
    %cst_10 = arith.constant 1.000000e+00 : f32
    %19 = vector.broadcast %cst_10 : f32 to vector<8x128xf32>
    %20 = arith.addf %19, %18 : vector<8x128xf32>
    %21 = arith.divf %19, %20 : vector<8x128xf32>
    %22 = vector.extract_strided_slice %21 {offsets = [0, 0], sizes = [8, 32], strides = [1, 1]} : vector<8x128xf32> to vector<8x32xf32>
    %23 = vector.extract_strided_slice %21 {offsets = [0, 32], sizes = [8, 32], strides = [1, 1]} : vector<8x128xf32> to vector<8x32xf32>
    %24 = vector.extract_strided_slice %21 {offsets = [0, 64], sizes = [8, 32], strides = [1, 1]} : vector<8x128xf32> to vector<8x32xf32>
    %cst_11 = arith.constant 2.000000e+00 : f32
    %25 = vector.broadcast %cst_11 : f32 to vector<8x32xf32>
    %26 = arith.mulf %25, %24 : vector<8x32xf32>
    %cst_12 = arith.constant 1.000000e+00 : f32
    %27 = vector.broadcast %cst_12 : f32 to vector<8x32xf32>
    %28 = arith.subf %26, %27 : vector<8x32xf32>
    %29 = vector.extract_strided_slice %21 {offsets = [0, 96], sizes = [8, 32], strides = [1, 1]} : vector<8x128xf32> to vector<8x32xf32>
    %30 = arith.mulf %23, %15 : vector<8x32xf32>
    %31 = arith.mulf %22, %28 : vector<8x32xf32>
    %32 = arith.addf %30, %31 : vector<8x32xf32>
    %33 = math.tanh %32 : vector<8x32xf32>
    %34 = arith.mulf %29, %33 : vector<8x32xf32>
    %35 = tpu.concatenate %34, %15 in 1 : vector<8x32xf32>, vector<8x32xf32> -> vector<8x64xf32>
    %36 = arith.truncf %35 : vector<8x64xf32> to vector<8x64xbf16>
    %cst_13 = arith.constant dense<0.000000e+00> : vector<8x256xf32>
    %37 = tpu.matmul %36, %8, %cst_13 {dimension_numbers = #tpu.dot_dimension_numbers<[1], [0], [0], [1], [0, 0, 1, 1], [], []>} : vector<8x64xbf16>, vector<64x256xbf16>, vector<8x256xf32> -> vector<8x256xf32>
    %38 = vector.extract_strided_slice %37 {offsets = [0, 128], sizes = [8, 128], strides = [1, 1]} : vector<8x256xf32> to vector<8x128xf32>
    %39 = arith.addf %38, %14 : vector<8x128xf32>
    %40 = arith.negf %39 : vector<8x128xf32>
    %41 = math.exp %40 : vector<8x128xf32>
    %cst_14 = arith.constant 1.000000e+00 : f32
    %42 = vector.broadcast %cst_14 : f32 to vector<8x128xf32>
    %43 = arith.addf %42, %41 : vector<8x128xf32>
    %44 = arith.divf %42, %43 : vector<8x128xf32>
    %45 = vector.extract_strided_slice %44 {offsets = [0, 0], sizes = [8, 32], strides = [1, 1]} : vector<8x128xf32> to vector<8x32xf32>
    %46 = vector.extract_strided_slice %44 {offsets = [0, 32], sizes = [8, 32], strides = [1, 1]} : vector<8x128xf32> to vector<8x32xf32>
    %47 = vector.extract_strided_slice %44 {offsets = [0, 64], sizes = [8, 32], strides = [1, 1]} : vector<8x128xf32> to vector<8x32xf32>
    %cst_15 = arith.constant 2.000000e+00 : f32
    %48 = vector.broadcast %cst_15 : f32 to vector<8x32xf32>
    %49 = arith.mulf %48, %47 : vector<8x32xf32>
    %cst_16 = arith.constant 1.000000e+00 : f32
    %50 = vector.broadcast %cst_16 : f32 to vector<8x32xf32>
    %51 = arith.subf %49, %50 : vector<8x32xf32>
    %52 = vector.extract_strided_slice %44 {offsets = [0, 96], sizes = [8, 32], strides = [1, 1]} : vector<8x128xf32> to vector<8x32xf32>
    %53 = arith.mulf %46, %15 : vector<8x32xf32>
    %54 = arith.mulf %45, %51 : vector<8x32xf32>
    %55 = arith.addf %53, %54 : vector<8x32xf32>
    %56 = math.tanh %55 : vector<8x32xf32>
    %57 = arith.mulf %52, %56 : vector<8x32xf32>
    %58 = vector.extract_strided_slice %37 {offsets = [0, 0], sizes = [8, 128], strides = [1, 1]} : vector<8x256xf32> to vector<8x128xf32>
    %59 = vector.extract_strided_slice %12 {offsets = [8, 0], sizes = [8, 128], strides = [1, 1]} : vector<64x128xf32> to vector<8x128xf32>
    %60 = arith.addf %58, %59 : vector<8x128xf32>
    %61 = arith.negf %60 : vector<8x128xf32>
    %62 = math.exp %61 : vector<8x128xf32>
    %cst_17 = arith.constant 1.000000e+00 : f32
    %63 = vector.broadcast %cst_17 : f32 to vector<8x128xf32>
    %64 = arith.addf %63, %62 : vector<8x128xf32>
    %65 = arith.divf %63, %64 : vector<8x128xf32>
    %66 = vector.extract_strided_slice %65 {offsets = [0, 0], sizes = [8, 32], strides = [1, 1]} : vector<8x128xf32> to vector<8x32xf32>
    %67 = vector.extract_strided_slice %65 {offsets = [0, 32], sizes = [8, 32], strides = [1, 1]} : vector<8x128xf32> to vector<8x32xf32>
    %68 = vector.extract_strided_slice %65 {offsets = [0, 64], sizes = [8, 32], strides = [1, 1]} : vector<8x128xf32> to vector<8x32xf32>
    %cst_18 = arith.constant 2.000000e+00 : f32
    %69 = vector.broadcast %cst_18 : f32 to vector<8x32xf32>
    %70 = arith.mulf %69, %68 : vector<8x32xf32>
    %cst_19 = arith.constant 1.000000e+00 : f32
    %71 = vector.broadcast %cst_19 : f32 to vector<8x32xf32>
    %72 = arith.subf %70, %71 : vector<8x32xf32>
    %73 = vector.extract_strided_slice %65 {offsets = [0, 96], sizes = [8, 32], strides = [1, 1]} : vector<8x128xf32> to vector<8x32xf32>
    %74 = arith.mulf %67, %32 : vector<8x32xf32>
    %75 = arith.mulf %66, %72 : vector<8x32xf32>
    %76 = arith.addf %74, %75 : vector<8x32xf32>
    %77 = math.tanh %76 : vector<8x32xf32>
    %78 = arith.mulf %73, %77 : vector<8x32xf32>
    %79 = tpu.concatenate %78, %57 in 1 : vector<8x32xf32>, vector<8x32xf32> -> vector<8x64xf32>
    %80 = arith.truncf %79 : vector<8x64xf32> to vector<8x64xbf16>
    %cst_20 = arith.constant dense<0.000000e+00> : vector<8x256xf32>
    %81 = tpu.matmul %80, %8, %cst_20 {dimension_numbers = #tpu.dot_dimension_numbers<[1], [0], [0], [1], [0, 0, 1, 1], [], []>} : vector<8x64xbf16>, vector<64x256xbf16>, vector<8x256xf32> -> vector<8x256xf32>
    %82 = vector.extract_strided_slice %81 {offsets = [0, 128], sizes = [8, 128], strides = [1, 1]} : vector<8x256xf32> to vector<8x128xf32>
    %83 = arith.addf %82, %14 : vector<8x128xf32>
    %84 = arith.negf %83 : vector<8x128xf32>
    %85 = math.exp %84 : vector<8x128xf32>
    %cst_21 = arith.constant 1.000000e+00 : f32
    %86 = vector.broadcast %cst_21 : f32 to vector<8x128xf32>
    %87 = arith.addf %86, %85 : vector<8x128xf32>
    %88 = arith.divf %86, %87 : vector<8x128xf32>
    %89 = vector.extract_strided_slice %88 {offsets = [0, 0], sizes = [8, 32], strides = [1, 1]} : vector<8x128xf32> to vector<8x32xf32>
    %90 = vector.extract_strided_slice %88 {offsets = [0, 32], sizes = [8, 32], strides = [1, 1]} : vector<8x128xf32> to vector<8x32xf32>
    %91 = vector.extract_strided_slice %88 {offsets = [0, 64], sizes = [8, 32], strides = [1, 1]} : vector<8x128xf32> to vector<8x32xf32>
    %cst_22 = arith.constant 2.000000e+00 : f32
    %92 = vector.broadcast %cst_22 : f32 to vector<8x32xf32>
    %93 = arith.mulf %92, %91 : vector<8x32xf32>
    %cst_23 = arith.constant 1.000000e+00 : f32
    %94 = vector.broadcast %cst_23 : f32 to vector<8x32xf32>
    %95 = arith.subf %93, %94 : vector<8x32xf32>
    %96 = vector.extract_strided_slice %88 {offsets = [0, 96], sizes = [8, 32], strides = [1, 1]} : vector<8x128xf32> to vector<8x32xf32>
    %97 = arith.mulf %90, %55 : vector<8x32xf32>
    %98 = arith.mulf %89, %95 : vector<8x32xf32>
    %99 = arith.addf %97, %98 : vector<8x32xf32>
    %100 = math.tanh %99 : vector<8x32xf32>
    %101 = arith.mulf %96, %100 : vector<8x32xf32>
    %102 = vector.extract_strided_slice %81 {offsets = [0, 0], sizes = [8, 128], strides = [1, 1]} : vector<8x256xf32> to vector<8x128xf32>
    %103 = vector.extract_strided_slice %12 {offsets = [16, 0], sizes = [8, 128], strides = [1, 1]} : vector<64x128xf32> to vector<8x128xf32>
    %104 = arith.addf %102, %103 : vector<8x128xf32>
    %105 = arith.negf %104 : vector<8x128xf32>
    %106 = math.exp %105 : vector<8x128xf32>
    %cst_24 = arith.constant 1.000000e+00 : f32
    %107 = vector.broadcast %cst_24 : f32 to vector<8x128xf32>
    %108 = arith.addf %107, %106 : vector<8x128xf32>
    %109 = arith.divf %107, %108 : vector<8x128xf32>
    %110 = vector.extract_strided_slice %109 {offsets = [0, 0], sizes = [8, 32], strides = [1, 1]} : vector<8x128xf32> to vector<8x32xf32>
    %111 = vector.extract_strided_slice %109 {offsets = [0, 32], sizes = [8, 32], strides = [1, 1]} : vector<8x128xf32> to vector<8x32xf32>
    %112 = vector.extract_strided_slice %109 {offsets = [0, 64], sizes = [8, 32], strides = [1, 1]} : vector<8x128xf32> to vector<8x32xf32>
    %cst_25 = arith.constant 2.000000e+00 : f32
    %113 = vector.broadcast %cst_25 : f32 to vector<8x32xf32>
    %114 = arith.mulf %113, %112 : vector<8x32xf32>
    %cst_26 = arith.constant 1.000000e+00 : f32
    %115 = vector.broadcast %cst_26 : f32 to vector<8x32xf32>
    %116 = arith.subf %114, %115 : vector<8x32xf32>
    %117 = vector.extract_strided_slice %109 {offsets = [0, 96], sizes = [8, 32], strides = [1, 1]} : vector<8x128xf32> to vector<8x32xf32>
    %118 = arith.mulf %111, %76 : vector<8x32xf32>
    %119 = arith.mulf %110, %116 : vector<8x32xf32>
    %120 = arith.addf %118, %119 : vector<8x32xf32>
    %121 = math.tanh %120 : vector<8x32xf32>
    %122 = arith.mulf %117, %121 : vector<8x32xf32>
    %123 = tpu.concatenate %122, %101 in 1 : vector<8x32xf32>, vector<8x32xf32> -> vector<8x64xf32>
    %124 = arith.truncf %123 : vector<8x64xf32> to vector<8x64xbf16>
    %cst_27 = arith.constant dense<0.000000e+00> : vector<8x256xf32>
    %125 = tpu.matmul %124, %8, %cst_27 {dimension_numbers = #tpu.dot_dimension_numbers<[1], [0], [0], [1], [0, 0, 1, 1], [], []>} : vector<8x64xbf16>, vector<64x256xbf16>, vector<8x256xf32> -> vector<8x256xf32>
    %126 = vector.extract_strided_slice %125 {offsets = [0, 128], sizes = [8, 128], strides = [1, 1]} : vector<8x256xf32> to vector<8x128xf32>
    %127 = arith.addf %126, %14 : vector<8x128xf32>
    %128 = arith.negf %127 : vector<8x128xf32>
    %129 = math.exp %128 : vector<8x128xf32>
    %cst_28 = arith.constant 1.000000e+00 : f32
    %130 = vector.broadcast %cst_28 : f32 to vector<8x128xf32>
    %131 = arith.addf %130, %129 : vector<8x128xf32>
    %132 = arith.divf %130, %131 : vector<8x128xf32>
    %133 = vector.extract_strided_slice %132 {offsets = [0, 0], sizes = [8, 32], strides = [1, 1]} : vector<8x128xf32> to vector<8x32xf32>
    %134 = vector.extract_strided_slice %132 {offsets = [0, 32], sizes = [8, 32], strides = [1, 1]} : vector<8x128xf32> to vector<8x32xf32>
    %135 = vector.extract_strided_slice %132 {offsets = [0, 64], sizes = [8, 32], strides = [1, 1]} : vector<8x128xf32> to vector<8x32xf32>
    %cst_29 = arith.constant 2.000000e+00 : f32
    %136 = vector.broadcast %cst_29 : f32 to vector<8x32xf32>
    %137 = arith.mulf %136, %135 : vector<8x32xf32>
    %cst_30 = arith.constant 1.000000e+00 : f32
    %138 = vector.broadcast %cst_30 : f32 to vector<8x32xf32>
    %139 = arith.subf %137, %138 : vector<8x32xf32>
    %140 = vector.extract_strided_slice %132 {offsets = [0, 96], sizes = [8, 32], strides = [1, 1]} : vector<8x128xf32> to vector<8x32xf32>
    %141 = arith.mulf %134, %99 : vector<8x32xf32>
    %142 = arith.mulf %133, %139 : vector<8x32xf32>
    %143 = arith.addf %141, %142 : vector<8x32xf32>
    %144 = math.tanh %143 : vector<8x32xf32>
    %145 = arith.mulf %140, %144 : vector<8x32xf32>
    %146 = vector.extract_strided_slice %125 {offsets = [0, 0], sizes = [8, 128], strides = [1, 1]} : vector<8x256xf32> to vector<8x128xf32>
    %147 = vector.extract_strided_slice %12 {offsets = [24, 0], sizes = [8, 128], strides = [1, 1]} : vector<64x128xf32> to vector<8x128xf32>
    %148 = arith.addf %146, %147 : vector<8x128xf32>
    %149 = arith.negf %148 : vector<8x128xf32>
    %150 = math.exp %149 : vector<8x128xf32>
    %cst_31 = arith.constant 1.000000e+00 : f32
    %151 = vector.broadcast %cst_31 : f32 to vector<8x128xf32>
    %152 = arith.addf %151, %150 : vector<8x128xf32>
    %153 = arith.divf %151, %152 : vector<8x128xf32>
    %154 = vector.extract_strided_slice %153 {offsets = [0, 0], sizes = [8, 32], strides = [1, 1]} : vector<8x128xf32> to vector<8x32xf32>
    %155 = vector.extract_strided_slice %153 {offsets = [0, 32], sizes = [8, 32], strides = [1, 1]} : vector<8x128xf32> to vector<8x32xf32>
    %156 = vector.extract_strided_slice %153 {offsets = [0, 64], sizes = [8, 32], strides = [1, 1]} : vector<8x128xf32> to vector<8x32xf32>
    %cst_32 = arith.constant 2.000000e+00 : f32
    %157 = vector.broadcast %cst_32 : f32 to vector<8x32xf32>
    %158 = arith.mulf %157, %156 : vector<8x32xf32>
    %cst_33 = arith.constant 1.000000e+00 : f32
    %159 = vector.broadcast %cst_33 : f32 to vector<8x32xf32>
    %160 = arith.subf %158, %159 : vector<8x32xf32>
    %161 = vector.extract_strided_slice %153 {offsets = [0, 96], sizes = [8, 32], strides = [1, 1]} : vector<8x128xf32> to vector<8x32xf32>
    %162 = arith.mulf %155, %120 : vector<8x32xf32>
    %163 = arith.mulf %154, %160 : vector<8x32xf32>
    %164 = arith.addf %162, %163 : vector<8x32xf32>
    %165 = math.tanh %164 : vector<8x32xf32>
    %166 = arith.mulf %161, %165 : vector<8x32xf32>
    %167 = tpu.concatenate %166, %145 in 1 : vector<8x32xf32>, vector<8x32xf32> -> vector<8x64xf32>
    %168 = arith.truncf %167 : vector<8x64xf32> to vector<8x64xbf16>
    %cst_34 = arith.constant dense<0.000000e+00> : vector<8x256xf32>
    %169 = tpu.matmul %168, %8, %cst_34 {dimension_numbers = #tpu.dot_dimension_numbers<[1], [0], [0], [1], [0, 0, 1, 1], [], []>} : vector<8x64xbf16>, vector<64x256xbf16>, vector<8x256xf32> -> vector<8x256xf32>
    %170 = vector.extract_strided_slice %169 {offsets = [0, 128], sizes = [8, 128], strides = [1, 1]} : vector<8x256xf32> to vector<8x128xf32>
    %171 = arith.addf %170, %14 : vector<8x128xf32>
    %172 = arith.negf %171 : vector<8x128xf32>
    %173 = math.exp %172 : vector<8x128xf32>
    %cst_35 = arith.constant 1.000000e+00 : f32
    %174 = vector.broadcast %cst_35 : f32 to vector<8x128xf32>
    %175 = arith.addf %174, %173 : vector<8x128xf32>
    %176 = arith.divf %174, %175 : vector<8x128xf32>
    %177 = vector.extract_strided_slice %176 {offsets = [0, 0], sizes = [8, 32], strides = [1, 1]} : vector<8x128xf32> to vector<8x32xf32>
    %178 = vector.extract_strided_slice %176 {offsets = [0, 32], sizes = [8, 32], strides = [1, 1]} : vector<8x128xf32> to vector<8x32xf32>
    %179 = vector.extract_strided_slice %176 {offsets = [0, 64], sizes = [8, 32], strides = [1, 1]} : vector<8x128xf32> to vector<8x32xf32>
    %cst_36 = arith.constant 2.000000e+00 : f32
    %180 = vector.broadcast %cst_36 : f32 to vector<8x32xf32>
    %181 = arith.mulf %180, %179 : vector<8x32xf32>
    %cst_37 = arith.constant 1.000000e+00 : f32
    %182 = vector.broadcast %cst_37 : f32 to vector<8x32xf32>
    %183 = arith.subf %181, %182 : vector<8x32xf32>
    %184 = vector.extract_strided_slice %176 {offsets = [0, 96], sizes = [8, 32], strides = [1, 1]} : vector<8x128xf32> to vector<8x32xf32>
    %185 = arith.mulf %178, %143 : vector<8x32xf32>
    %186 = arith.mulf %177, %183 : vector<8x32xf32>
    %187 = arith.addf %185, %186 : vector<8x32xf32>
    %188 = math.tanh %187 : vector<8x32xf32>
    %189 = arith.mulf %184, %188 : vector<8x32xf32>
    %190 = vector.extract_strided_slice %169 {offsets = [0, 0], sizes = [8, 128], strides = [1, 1]} : vector<8x256xf32> to vector<8x128xf32>
    %191 = vector.extract_strided_slice %12 {offsets = [32, 0], sizes = [8, 128], strides = [1, 1]} : vector<64x128xf32> to vector<8x128xf32>
    %192 = arith.addf %190, %191 : vector<8x128xf32>
    %193 = arith.negf %192 : vector<8x128xf32>
    %194 = math.exp %193 : vector<8x128xf32>
    %cst_38 = arith.constant 1.000000e+00 : f32
    %195 = vector.broadcast %cst_38 : f32 to vector<8x128xf32>
    %196 = arith.addf %195, %194 : vector<8x128xf32>
    %197 = arith.divf %195, %196 : vector<8x128xf32>
    %198 = vector.extract_strided_slice %197 {offsets = [0, 0], sizes = [8, 32], strides = [1, 1]} : vector<8x128xf32> to vector<8x32xf32>
    %199 = vector.extract_strided_slice %197 {offsets = [0, 32], sizes = [8, 32], strides = [1, 1]} : vector<8x128xf32> to vector<8x32xf32>
    %200 = vector.extract_strided_slice %197 {offsets = [0, 64], sizes = [8, 32], strides = [1, 1]} : vector<8x128xf32> to vector<8x32xf32>
    %cst_39 = arith.constant 2.000000e+00 : f32
    %201 = vector.broadcast %cst_39 : f32 to vector<8x32xf32>
    %202 = arith.mulf %201, %200 : vector<8x32xf32>
    %cst_40 = arith.constant 1.000000e+00 : f32
    %203 = vector.broadcast %cst_40 : f32 to vector<8x32xf32>
    %204 = arith.subf %202, %203 : vector<8x32xf32>
    %205 = vector.extract_strided_slice %197 {offsets = [0, 96], sizes = [8, 32], strides = [1, 1]} : vector<8x128xf32> to vector<8x32xf32>
    %206 = arith.mulf %199, %164 : vector<8x32xf32>
    %207 = arith.mulf %198, %204 : vector<8x32xf32>
    %208 = arith.addf %206, %207 : vector<8x32xf32>
    %209 = math.tanh %208 : vector<8x32xf32>
    %210 = arith.mulf %205, %209 : vector<8x32xf32>
    %211 = tpu.concatenate %210, %189 in 1 : vector<8x32xf32>, vector<8x32xf32> -> vector<8x64xf32>
    %212 = arith.truncf %211 : vector<8x64xf32> to vector<8x64xbf16>
    %cst_41 = arith.constant dense<0.000000e+00> : vector<8x256xf32>
    %213 = tpu.matmul %212, %8, %cst_41 {dimension_numbers = #tpu.dot_dimension_numbers<[1], [0], [0], [1], [0, 0, 1, 1], [], []>} : vector<8x64xbf16>, vector<64x256xbf16>, vector<8x256xf32> -> vector<8x256xf32>
    %214 = vector.extract_strided_slice %213 {offsets = [0, 128], sizes = [8, 128], strides = [1, 1]} : vector<8x256xf32> to vector<8x128xf32>
    %215 = arith.addf %214, %14 : vector<8x128xf32>
    %216 = arith.negf %215 : vector<8x128xf32>
    %217 = math.exp %216 : vector<8x128xf32>
    %cst_42 = arith.constant 1.000000e+00 : f32
    %218 = vector.broadcast %cst_42 : f32 to vector<8x128xf32>
    %219 = arith.addf %218, %217 : vector<8x128xf32>
    %220 = arith.divf %218, %219 : vector<8x128xf32>
    %221 = vector.extract_strided_slice %220 {offsets = [0, 0], sizes = [8, 32], strides = [1, 1]} : vector<8x128xf32> to vector<8x32xf32>
    %222 = vector.extract_strided_slice %220 {offsets = [0, 32], sizes = [8, 32], strides = [1, 1]} : vector<8x128xf32> to vector<8x32xf32>
    %223 = vector.extract_strided_slice %220 {offsets = [0, 64], sizes = [8, 32], strides = [1, 1]} : vector<8x128xf32> to vector<8x32xf32>
    %cst_43 = arith.constant 2.000000e+00 : f32
    %224 = vector.broadcast %cst_43 : f32 to vector<8x32xf32>
    %225 = arith.mulf %224, %223 : vector<8x32xf32>
    %cst_44 = arith.constant 1.000000e+00 : f32
    %226 = vector.broadcast %cst_44 : f32 to vector<8x32xf32>
    %227 = arith.subf %225, %226 : vector<8x32xf32>
    %228 = vector.extract_strided_slice %220 {offsets = [0, 96], sizes = [8, 32], strides = [1, 1]} : vector<8x128xf32> to vector<8x32xf32>
    %229 = arith.mulf %222, %187 : vector<8x32xf32>
    %230 = arith.mulf %221, %227 : vector<8x32xf32>
    %231 = arith.addf %229, %230 : vector<8x32xf32>
    %232 = math.tanh %231 : vector<8x32xf32>
    %233 = arith.mulf %228, %232 : vector<8x32xf32>
    %234 = vector.extract_strided_slice %213 {offsets = [0, 0], sizes = [8, 128], strides = [1, 1]} : vector<8x256xf32> to vector<8x128xf32>
    %235 = vector.extract_strided_slice %12 {offsets = [40, 0], sizes = [8, 128], strides = [1, 1]} : vector<64x128xf32> to vector<8x128xf32>
    %236 = arith.addf %234, %235 : vector<8x128xf32>
    %237 = arith.negf %236 : vector<8x128xf32>
    %238 = math.exp %237 : vector<8x128xf32>
    %cst_45 = arith.constant 1.000000e+00 : f32
    %239 = vector.broadcast %cst_45 : f32 to vector<8x128xf32>
    %240 = arith.addf %239, %238 : vector<8x128xf32>
    %241 = arith.divf %239, %240 : vector<8x128xf32>
    %242 = vector.extract_strided_slice %241 {offsets = [0, 0], sizes = [8, 32], strides = [1, 1]} : vector<8x128xf32> to vector<8x32xf32>
    %243 = vector.extract_strided_slice %241 {offsets = [0, 32], sizes = [8, 32], strides = [1, 1]} : vector<8x128xf32> to vector<8x32xf32>
    %244 = vector.extract_strided_slice %241 {offsets = [0, 64], sizes = [8, 32], strides = [1, 1]} : vector<8x128xf32> to vector<8x32xf32>
    %cst_46 = arith.constant 2.000000e+00 : f32
    %245 = vector.broadcast %cst_46 : f32 to vector<8x32xf32>
    %246 = arith.mulf %245, %244 : vector<8x32xf32>
    %cst_47 = arith.constant 1.000000e+00 : f32
    %247 = vector.broadcast %cst_47 : f32 to vector<8x32xf32>
    %248 = arith.subf %246, %247 : vector<8x32xf32>
    %249 = vector.extract_strided_slice %241 {offsets = [0, 96], sizes = [8, 32], strides = [1, 1]} : vector<8x128xf32> to vector<8x32xf32>
    %250 = arith.mulf %243, %208 : vector<8x32xf32>
    %251 = arith.mulf %242, %248 : vector<8x32xf32>
    %252 = arith.addf %250, %251 : vector<8x32xf32>
    %253 = math.tanh %252 : vector<8x32xf32>
    %254 = arith.mulf %249, %253 : vector<8x32xf32>
    %255 = tpu.concatenate %254, %233 in 1 : vector<8x32xf32>, vector<8x32xf32> -> vector<8x64xf32>
    %256 = arith.truncf %255 : vector<8x64xf32> to vector<8x64xbf16>
    %cst_48 = arith.constant dense<0.000000e+00> : vector<8x256xf32>
    %257 = tpu.matmul %256, %8, %cst_48 {dimension_numbers = #tpu.dot_dimension_numbers<[1], [0], [0], [1], [0, 0, 1, 1], [], []>} : vector<8x64xbf16>, vector<64x256xbf16>, vector<8x256xf32> -> vector<8x256xf32>
    %258 = vector.extract_strided_slice %257 {offsets = [0, 128], sizes = [8, 128], strides = [1, 1]} : vector<8x256xf32> to vector<8x128xf32>
    %259 = arith.addf %258, %14 : vector<8x128xf32>
    %260 = arith.negf %259 : vector<8x128xf32>
    %261 = math.exp %260 : vector<8x128xf32>
    %cst_49 = arith.constant 1.000000e+00 : f32
    %262 = vector.broadcast %cst_49 : f32 to vector<8x128xf32>
    %263 = arith.addf %262, %261 : vector<8x128xf32>
    %264 = arith.divf %262, %263 : vector<8x128xf32>
    %265 = vector.extract_strided_slice %264 {offsets = [0, 0], sizes = [8, 32], strides = [1, 1]} : vector<8x128xf32> to vector<8x32xf32>
    %266 = vector.extract_strided_slice %264 {offsets = [0, 32], sizes = [8, 32], strides = [1, 1]} : vector<8x128xf32> to vector<8x32xf32>
    %267 = vector.extract_strided_slice %264 {offsets = [0, 64], sizes = [8, 32], strides = [1, 1]} : vector<8x128xf32> to vector<8x32xf32>
    %cst_50 = arith.constant 2.000000e+00 : f32
    %268 = vector.broadcast %cst_50 : f32 to vector<8x32xf32>
    %269 = arith.mulf %268, %267 : vector<8x32xf32>
    %cst_51 = arith.constant 1.000000e+00 : f32
    %270 = vector.broadcast %cst_51 : f32 to vector<8x32xf32>
    %271 = arith.subf %269, %270 : vector<8x32xf32>
    %272 = vector.extract_strided_slice %264 {offsets = [0, 96], sizes = [8, 32], strides = [1, 1]} : vector<8x128xf32> to vector<8x32xf32>
    %273 = arith.mulf %266, %231 : vector<8x32xf32>
    %274 = arith.mulf %265, %271 : vector<8x32xf32>
    %275 = arith.addf %273, %274 : vector<8x32xf32>
    %276 = math.tanh %275 : vector<8x32xf32>
    %277 = arith.mulf %272, %276 : vector<8x32xf32>
    %278 = vector.extract_strided_slice %257 {offsets = [0, 0], sizes = [8, 128], strides = [1, 1]} : vector<8x256xf32> to vector<8x128xf32>
    %279 = vector.extract_strided_slice %12 {offsets = [48, 0], sizes = [8, 128], strides = [1, 1]} : vector<64x128xf32> to vector<8x128xf32>
    %280 = arith.addf %278, %279 : vector<8x128xf32>
    %281 = arith.negf %280 : vector<8x128xf32>
    %282 = math.exp %281 : vector<8x128xf32>
    %cst_52 = arith.constant 1.000000e+00 : f32
    %283 = vector.broadcast %cst_52 : f32 to vector<8x128xf32>
    %284 = arith.addf %283, %282 : vector<8x128xf32>
    %285 = arith.divf %283, %284 : vector<8x128xf32>
    %286 = vector.extract_strided_slice %285 {offsets = [0, 0], sizes = [8, 32], strides = [1, 1]} : vector<8x128xf32> to vector<8x32xf32>
    %287 = vector.extract_strided_slice %285 {offsets = [0, 32], sizes = [8, 32], strides = [1, 1]} : vector<8x128xf32> to vector<8x32xf32>
    %288 = vector.extract_strided_slice %285 {offsets = [0, 64], sizes = [8, 32], strides = [1, 1]} : vector<8x128xf32> to vector<8x32xf32>
    %cst_53 = arith.constant 2.000000e+00 : f32
    %289 = vector.broadcast %cst_53 : f32 to vector<8x32xf32>
    %290 = arith.mulf %289, %288 : vector<8x32xf32>
    %cst_54 = arith.constant 1.000000e+00 : f32
    %291 = vector.broadcast %cst_54 : f32 to vector<8x32xf32>
    %292 = arith.subf %290, %291 : vector<8x32xf32>
    %293 = vector.extract_strided_slice %285 {offsets = [0, 96], sizes = [8, 32], strides = [1, 1]} : vector<8x128xf32> to vector<8x32xf32>
    %294 = arith.mulf %287, %252 : vector<8x32xf32>
    %295 = arith.mulf %286, %292 : vector<8x32xf32>
    %296 = arith.addf %294, %295 : vector<8x32xf32>
    %297 = math.tanh %296 : vector<8x32xf32>
    %298 = arith.mulf %293, %297 : vector<8x32xf32>
    %299 = tpu.concatenate %298, %277 in 1 : vector<8x32xf32>, vector<8x32xf32> -> vector<8x64xf32>
    %300 = arith.truncf %299 : vector<8x64xf32> to vector<8x64xbf16>
    %cst_55 = arith.constant dense<0.000000e+00> : vector<8x256xf32>
    %301 = tpu.matmul %300, %8, %cst_55 {dimension_numbers = #tpu.dot_dimension_numbers<[1], [0], [0], [1], [0, 0, 1, 1], [], []>} : vector<8x64xbf16>, vector<64x256xbf16>, vector<8x256xf32> -> vector<8x256xf32>
    %302 = vector.extract_strided_slice %301 {offsets = [0, 128], sizes = [8, 128], strides = [1, 1]} : vector<8x256xf32> to vector<8x128xf32>
    %303 = arith.addf %302, %14 : vector<8x128xf32>
    %304 = arith.negf %303 : vector<8x128xf32>
    %305 = math.exp %304 : vector<8x128xf32>
    %cst_56 = arith.constant 1.000000e+00 : f32
    %306 = vector.broadcast %cst_56 : f32 to vector<8x128xf32>
    %307 = arith.addf %306, %305 : vector<8x128xf32>
    %308 = arith.divf %306, %307 : vector<8x128xf32>
    %309 = vector.extract_strided_slice %308 {offsets = [0, 0], sizes = [8, 32], strides = [1, 1]} : vector<8x128xf32> to vector<8x32xf32>
    %310 = vector.extract_strided_slice %308 {offsets = [0, 32], sizes = [8, 32], strides = [1, 1]} : vector<8x128xf32> to vector<8x32xf32>
    %311 = vector.extract_strided_slice %308 {offsets = [0, 64], sizes = [8, 32], strides = [1, 1]} : vector<8x128xf32> to vector<8x32xf32>
    %cst_57 = arith.constant 2.000000e+00 : f32
    %312 = vector.broadcast %cst_57 : f32 to vector<8x32xf32>
    %313 = arith.mulf %312, %311 : vector<8x32xf32>
    %cst_58 = arith.constant 1.000000e+00 : f32
    %314 = vector.broadcast %cst_58 : f32 to vector<8x32xf32>
    %315 = arith.subf %313, %314 : vector<8x32xf32>
    %316 = vector.extract_strided_slice %308 {offsets = [0, 96], sizes = [8, 32], strides = [1, 1]} : vector<8x128xf32> to vector<8x32xf32>
    %317 = arith.mulf %310, %275 : vector<8x32xf32>
    %318 = arith.mulf %309, %315 : vector<8x32xf32>
    %319 = arith.addf %317, %318 : vector<8x32xf32>
    %320 = math.tanh %319 : vector<8x32xf32>
    %321 = arith.mulf %316, %320 : vector<8x32xf32>
    %322 = vector.extract_strided_slice %301 {offsets = [0, 0], sizes = [8, 128], strides = [1, 1]} : vector<8x256xf32> to vector<8x128xf32>
    %323 = vector.extract_strided_slice %12 {offsets = [56, 0], sizes = [8, 128], strides = [1, 1]} : vector<64x128xf32> to vector<8x128xf32>
    %324 = arith.addf %322, %323 : vector<8x128xf32>
    %325 = arith.negf %324 : vector<8x128xf32>
    %326 = math.exp %325 : vector<8x128xf32>
    %cst_59 = arith.constant 1.000000e+00 : f32
    %327 = vector.broadcast %cst_59 : f32 to vector<8x128xf32>
    %328 = arith.addf %327, %326 : vector<8x128xf32>
    %329 = arith.divf %327, %328 : vector<8x128xf32>
    %330 = vector.extract_strided_slice %329 {offsets = [0, 0], sizes = [8, 32], strides = [1, 1]} : vector<8x128xf32> to vector<8x32xf32>
    %331 = vector.extract_strided_slice %329 {offsets = [0, 32], sizes = [8, 32], strides = [1, 1]} : vector<8x128xf32> to vector<8x32xf32>
    %332 = vector.extract_strided_slice %329 {offsets = [0, 64], sizes = [8, 32], strides = [1, 1]} : vector<8x128xf32> to vector<8x32xf32>
    %cst_60 = arith.constant 2.000000e+00 : f32
    %333 = vector.broadcast %cst_60 : f32 to vector<8x32xf32>
    %334 = arith.mulf %333, %332 : vector<8x32xf32>
    %cst_61 = arith.constant 1.000000e+00 : f32
    %335 = vector.broadcast %cst_61 : f32 to vector<8x32xf32>
    %336 = arith.subf %334, %335 : vector<8x32xf32>
    %337 = vector.extract_strided_slice %329 {offsets = [0, 96], sizes = [8, 32], strides = [1, 1]} : vector<8x128xf32> to vector<8x32xf32>
    %338 = arith.mulf %331, %296 : vector<8x32xf32>
    %339 = arith.mulf %330, %336 : vector<8x32xf32>
    %340 = arith.addf %338, %339 : vector<8x32xf32>
    %341 = math.tanh %340 : vector<8x32xf32>
    %342 = arith.mulf %337, %341 : vector<8x32xf32>
    %343 = tpu.concatenate %342, %321 in 1 : vector<8x32xf32>, vector<8x32xf32> -> vector<8x64xf32>
    %344 = arith.truncf %343 : vector<8x64xf32> to vector<8x64xbf16>
    %cst_62 = arith.constant dense<0.000000e+00> : vector<8x256xf32>
    %345 = tpu.matmul %344, %8, %cst_62 {dimension_numbers = #tpu.dot_dimension_numbers<[1], [0], [0], [1], [0, 0, 1, 1], [], []>} : vector<8x64xbf16>, vector<64x256xbf16>, vector<8x256xf32> -> vector<8x256xf32>
    %346 = vector.extract_strided_slice %345 {offsets = [0, 128], sizes = [8, 128], strides = [1, 1]} : vector<8x256xf32> to vector<8x128xf32>
    %347 = arith.addf %346, %14 : vector<8x128xf32>
    %348 = arith.negf %347 : vector<8x128xf32>
    %349 = math.exp %348 : vector<8x128xf32>
    %cst_63 = arith.constant 1.000000e+00 : f32
    %350 = vector.broadcast %cst_63 : f32 to vector<8x128xf32>
    %351 = arith.addf %350, %349 : vector<8x128xf32>
    %352 = arith.divf %350, %351 : vector<8x128xf32>
    %353 = vector.extract_strided_slice %352 {offsets = [0, 0], sizes = [8, 32], strides = [1, 1]} : vector<8x128xf32> to vector<8x32xf32>
    %354 = vector.extract_strided_slice %352 {offsets = [0, 32], sizes = [8, 32], strides = [1, 1]} : vector<8x128xf32> to vector<8x32xf32>
    %355 = vector.extract_strided_slice %352 {offsets = [0, 64], sizes = [8, 32], strides = [1, 1]} : vector<8x128xf32> to vector<8x32xf32>
    %cst_64 = arith.constant 2.000000e+00 : f32
    %356 = vector.broadcast %cst_64 : f32 to vector<8x32xf32>
    %357 = arith.mulf %356, %355 : vector<8x32xf32>
    %cst_65 = arith.constant 1.000000e+00 : f32
    %358 = vector.broadcast %cst_65 : f32 to vector<8x32xf32>
    %359 = arith.subf %357, %358 : vector<8x32xf32>
    %360 = vector.extract_strided_slice %352 {offsets = [0, 96], sizes = [8, 32], strides = [1, 1]} : vector<8x128xf32> to vector<8x32xf32>
    %361 = arith.mulf %354, %319 : vector<8x32xf32>
    %362 = arith.mulf %353, %359 : vector<8x32xf32>
    %363 = arith.addf %361, %362 : vector<8x32xf32>
    %364 = math.tanh %363 : vector<8x32xf32>
    %365 = arith.mulf %360, %364 : vector<8x32xf32>
    %cst_66 = arith.constant dense<0.000000e+00> : vector<8x128xf32>
    %366 = tpu.matmul %365, %3, %cst_66 {dimension_numbers = #tpu.dot_dimension_numbers<[1], [0], [0], [1], [0, 0, 1, 1], [], []>} : vector<8x32xf32>, vector<32x128xf32>, vector<8x128xf32> -> vector<8x128xf32>
    %367 = vector.broadcast %4 : vector<1x128xf32> to vector<8x128xf32>
    %368 = arith.addf %366, %367 : vector<8x128xf32>
    %c0_67 = arith.constant 0 : index
    %c0_68 = arith.constant 0 : index
    %369 = vector.load %arg2[%c0_67, %c0_68] : memref<8x128xf32, #tpu.memory_space<vmem>>, vector<8x128xf32>
    tpu.vector_store %arg2[%c0_67, %c0_68], %368 {strides = array<i32>} : memref<8x128xf32, #tpu.memory_space<vmem>>, vector<8x128xf32>,
    return
  }
}

</mosaic_0001>

<bundles_post_ra>
// kernel: forward.1
= control target key start
LH: loop header
LB: loop body
LE: loop exit
PB: predicated region body
PF: predicated region fallthrough
CT: control target
= control target key end

     0   :  { %7 = vsyncpa [#allocation3], 0  ;;  %s1277_s12 = smov [#allocation2]   ;;  %s1278_s14 = smov 128   ;;  %s1575_s0 = inlined_call_operand.vmem [shape: f32[64,16], index: 0, kind: input, shape index: {}]   ;;  %s1576_s1 = inlined_call_operand.hbm [shape: f32[200,128], index: 1, kind: input, shape index: {}]   ;;  %s1577_s2 = inlined_call_operand.vmem [shape: f32[8,128], index: 2, kind: output, shape index: {}]  }
   0x1   :  { %s14_s11 = sshll.u32 %s1576_s1, 4  ;;  %s16_s13 = sshll.u32 %s1277_s12, 4  ;;  %s15_s11 = int_to_ptr.hbm [resolvable:$true] %s14_s11  ;;  %s17_s13 = int_to_ptr.vmem [resolvable:$true] %s16_s13 }
   0x2   :  { %s1279_s15 = smov 8  }
   0x3   :  { %22 = dma.hbm_to_vmem [thread:$0]  %s15_s11, 3200, %s17_s13, [#allocation3], %s1278_s14, %s1278_s14, %s1279_s15  }
   0x4   :  { %1275 = dma.done.wait [#allocation3], 3200  }
   0x5   :  { %1276 = vsyncadd [#allocation3], 4294964096  ;;  %v29_v0 = vld [vmem:[#allocation2 + $0x8] sm:$0xff]  ;;  %v28_v1 = vld [vmem:[#allocation2] sm:$0xff]  ;;  %vm70_vm0 = vcmask 130048   ;;  %s1280_s1 = smov 64  }
   0x6   :  { %109 = vmatpush.msra.mxu0 %v29_v0  ;;  %v61_v2 = vld [vmem:[%s1575_s0] sm:$0xff]  ;;  %v1304_v3 = vld [vmem:[#allocation2 + $0x10] ss:$0 sm:$0xff]  ;;  %s1281_s18 = smov 32   ;;  %v43_v27 = vld [vmem:[#allocation2 + $0x78] sm:$0xff]  ;;  %vm179_vm5 = vcmask 261120  }
   0x7   :  { %v44_v28 = vld [vmem:[#allocation2 + $0x80] sm:$0xff]  ;;  %v51_v29 = vld [vmem:[#allocation2 + $0xb8] sm:$0xff]  ;;  %v41_v32 = vld [vmem:[#allocation2 + $0x68] sm:$0xff]  ;;  %vm182_vm6 = vcmask 523264  }
   0x8   :  { %110 = vmatpush.msra.mxu0 %v28_v1  ;;  %v1313_v30 = vpack.c.bf16 %v44_v28, %v43_v27  ;;  %v52_v31 = vld [vmem:[#allocation2 + $0xc0] sm:$0xff]  ;;  %v42_v33 = vld [vmem:[#allocation2 + $0x70] sm:$0xff]  ;;  %v49_v35 = vld [vmem:[#allocation2 + $0xa8] sm:$0xff] }
   0x9   :  { %1089 = vmatmul.msk.f32.vlgmr.msra.gmra.mxu0 %vm70_vm0, %v61_v2  ;;  %v1315_v34 = vpack.c.bf16 %v52_v31, %v51_v29  ;;  %v50_v36 = vld [vmem:[#allocation2 + $0xb0] sm:$0xff]  ;;  %v1318_v37 = vpack.c.bf16 %v42_v33, %v41_v32  ;;  %v39_v39 = vld [vmem:[#allocation2 + $0x58] sm:$0xff]  ;;  %v40_v40 = vld [vmem:[#allocation2 + $0x60] sm:$0xff] }
   0xa   :  { %190 = vmatpush.bf16.msra.mxu1 %v1313_v30  ;;  %307 = vmatpush.bf16.msra.mxu3 %v1313_v30  ;;  %v1322_v38 = vpack.c.bf16 %v50_v36, %v49_v35  ;;  %v47_v41 = vld [vmem:[#allocation2 + $0x98] sm:$0xff]  ;;  %v48_v42 = vld [vmem:[#allocation2 + $0xa0] sm:$0xff]  ;;  %v1326_v43 = vpack.c.bf16 %v40_v40, %v39_v39  ;;  %v37_v47 = vld [vmem:[#allocation2 + $0x48] sm:$0xff] }
   0xb   :  { %203 = vmatpush.bf16.msra.mxu2 %v1315_v34  ;;  %892 = vmatpush.bf16.msrb.mxu0 %v1313_v30  ;;  %v1330_v44 = vpack.c.bf16 %v48_v42, %v47_v41  ;;  %v38_v48 = vld [vmem:[#allocation2 + $0x50] sm:$0xff]  ;;  %v45_v49 = vld [vmem:[#allocation2 + $0x88] sm:$0xff]  ;;  %v1374_v62 = vld [vmem:[#allocation2 + $0x18] ss:$0 sm:$0xff] }
   0xc   :  { %v1338_v50 = vpack.c.bf16 %v38_v48, %v37_v47  ;;  %v46_v51 = vld [vmem:[#allocation2 + $0x90] sm:$0xff]  ;;  %v62_v53 = vld [vmem:[%s1575_s0 + $0x8] sm:$0xff] }
   0xd   :  { %v1340_v52 = vpack.c.bf16 %v46_v51, %v45_v49 }
   0xe   :  { %191 = vmatpush.bf16.msra.mxu1 %v1318_v37  ;;  %308 = vmatpush.bf16.msra.mxu3 %v1318_v37 }
   0xf   :  { %204 = vmatpush.bf16.msra.mxu2 %v1322_v38  ;;  %893 = vmatpush.bf16.msrb.mxu0 %v1318_v37 }
  0x11   :  { %1090 = vmatmul.msk.f32.gmra.mxu0 %vm70_vm0, %v62_v53 }
  0x12   :  { %192 = vmatpush.bf16.msra.mxu1 %v1326_v43  ;;  %309 = vmatpush.bf16.msra.mxu3 %v1326_v43 }
  0x13   :  { %205 = vmatpush.bf16.msra.mxu2 %v1330_v44  ;;  %894 = vmatpush.bf16.msrb.mxu0 %v1326_v43 }
  0x16   :  { %193 = vmatpush.bf16.msra.mxu1 %v1338_v50  ;;  %310 = vmatpush.bf16.msra.mxu3 %v1338_v50 }
  0x17   :  { %206 = vmatpush.bf16.msra.mxu2 %v1340_v52  ;;  %895 = vmatpush.bf16.msrb.mxu0 %v1338_v50 }
  0x1a   :  { %320 = vmatpush.bf16.msrb.mxu1 %v1315_v34  ;;  %437 = vmatpush.bf16.msrb.mxu3 %v1315_v34 }
  0x1b   :  { %424 = vmatpush.bf16.msrb.mxu2 %v1313_v30 }
  0x1e   :  { %321 = vmatpush.bf16.msrb.mxu1 %v1322_v38  ;;  %438 = vmatpush.bf16.msrb.mxu3 %v1322_v38 }
  0x1f   :  { %425 = vmatpush.bf16.msrb.mxu2 %v1318_v37 }
  0x22   :  { %322 = vmatpush.bf16.msrb.mxu1 %v1330_v44  ;;  %439 = vmatpush.bf16.msrb.mxu3 %v1330_v44 }
  0x23   :  { %426 = vmatpush.bf16.msrb.mxu2 %v1326_v43 }
  0x26   :  { %323 = vmatpush.bf16.msrb.mxu1 %v1340_v52  ;;  %440 = vmatpush.bf16.msrb.mxu3 %v1340_v52 }
  0x27   :  { %427 = vmatpush.bf16.msrb.mxu2 %v1338_v50 }
  0x86   :  { %v112_v4 = vpop.f32.mrf.mxu0 }
  0x87   :  { %v113_v5 = vadd.f32 %v1304_v3, %v112_v4 }
  0x89   :  { %v1097_v6 = vmul.f32 -1.442695, %v113_v5 }
  0x8b   :  { %1153 = vpow2.f32 %v1097_v6 }
  0x8e   :  { %v115_v57 = vpop.f32.mrf.mxu0 }
  0x8f   :  { %v116_v58 = vadd.f32 %v1304_v3, %v115_v57 }
  0x91   :  { %v1154_v7 = vpop.eup %1153 }
  0x92   :  { %v140_v8 = vadd.f32 1.0, %v1154_v7 }
  0x94   :  { %1155 = vrcp.f32 %v140_v8  ;;  %v152_v12 = vand.u32 2147483648, %v140_v8  ;;  %v150_v14 = vand.u32 2147483647, %v140_v8  ;;  %vm146_vm2 = vweird.f32 %v140_v8 }
  0x96   :  { %v153_v16 = vor.u32 1.1754944e-38, %v152_v12  ;;  %vm151_vm4 = vcmp.eq.f32.partialorder %v150_v14, 8.507059e+37 }
  0x9a   :  { %v1156_v9 = vpop.eup %1155 }
  0x9b   :  { %v142_v10 = vmul.f32 %v1156_v9, %v140_v8  ;;  %vm147_vm1 = vweird.f32 %v1156_v9 }
  0x9c   :  { %vm148_vm3 = vmor %vm146_vm2, %vm147_vm1 }
  0x9d   :  { %v143_v11 = vsub.f32 1.0, %v142_v10 }
  0x9f   :  { %v144_v13 = vmul.f32 %v1156_v9, %v143_v11 }
  0xa1   :  { %v145_v15 = vadd.f32 %v1156_v9, %v144_v13 }
  0xa3   :  { %v149_v17 = vsel %vm148_vm3, %v1156_v9, %v145_v15 }
  0xa4   :  { %v154_v18 = vsel %vm151_vm4, %v153_v16, %v149_v17 }
  0xa5   :  { %v156_v19 = vmul.f32 2.0, %v154_v18  ;;  %v158_v23 = vmul.f32 0.0, %v154_v18 }
  0xa7   :  { %v1098_v20 = vadd.f32 -1.0, %v156_v19 }
  0xa9   :  { %160 = vrot.lane.b32.xlu0 %v1098_v20, %s1280_s1 }
 0x11b   :  { %v161_v21 = vpop.permute.xlu0 %160 }
 0x11c   :  { %v163_v22 = vmul.f32 %v161_v21, %v154_v18 }
 0x11e   :  { %165 = vrot.lane.b32.xlu0 %v163_v22, %s1281_s18 }
 0x190   :  { %v166_v24 = vpop.permute.xlu0 %165 }
 0x191   :  { %v1309_v25 = vadd.f32 %v166_v24, %v158_v23 }
 0x193   :  { %1157 = vtanh.f32 %v1309_v25 }
 0x199   :  { %v1158_v26 = vpop.eup %1157 }
 0x19a   :  { %171 = vrot.lane.b32.xlu1 %v1158_v26, %s1280_s1 }
 0x20c   :  { %v172_v45 = vpop.permute.xlu1 %171 }
 0x20d   :  { %v174_v46 = vmul.f32 %v172_v45, %v154_v18 }
 0x20f   :  { %176 = vrot.lane.b32.xlu1 %v174_v46, %s1281_s18 }
 0x281   :  { %v177_v54 = vpop.permute.xlu1 %176 }
 0x282   :  { %v180_v55 = vsel %vm179_vm5, %v177_v54, 0.0 }
 0x283   :  { %v181_v56 = vpack.c.bf16 %v180_v55, %v180_v55 }
 0x285   :  { %1099 = vmatmul.msk.bf16.vlgmr.msra.gmra.mxu1 %vm182_vm6, %v181_v56  ;;  %1100 = vmatmul.msk.bf16.vlgmr.msra.gmra.mxu2 %vm182_vm6, %v181_v56 }
 0x286   :  { %541 = vmatpush.bf16.msra.mxu1 %v1313_v30  ;;  %554 = vmatpush.bf16.msra.mxu2 %v1315_v34 }
 0x28a   :  { %542 = vmatpush.bf16.msra.mxu1 %v1318_v37  ;;  %555 = vmatpush.bf16.msra.mxu2 %v1322_v38 }
 0x28e   :  { %543 = vmatpush.bf16.msra.mxu1 %v1326_v43  ;;  %556 = vmatpush.bf16.msra.mxu2 %v1330_v44 }
 0x292   :  { %544 = vmatpush.bf16.msra.mxu1 %v1338_v50  ;;  %557 = vmatpush.bf16.msra.mxu2 %v1340_v52 }
 0x302   :  { %v195_v59 = vpop.f32.mrf.mxu1 }
 0x303   :  { %v251_v60 = vadd.f32 %v195_v59, %v116_v58 }
 0x305   :  { %v1103_v61 = vmul.f32 -1.442695, %v251_v60 }
 0x307   :  { %1159 = vpow2.f32 %v1103_v61 }
 0x308   :  { %v208_v63 = vpop.f32.mrf.mxu2 }
 0x309   :  { %v212_v0 = vadd.f32 %v1374_v62, %v208_v63 }
 0x30a   :  { %v197_v1 = vpop.f32.mrf.mxu1 }
 0x30b   :  { %v1101_v2 = vmul.f32 -1.442695, %v212_v0 }
 0x30d   :  { %v1160_v4 = vpop.eup %1159  ;;  %1161 = vpow2.f32 %v1101_v2 }
 0x30e   :  { %v255_v5 = vadd.f32 1.0, %v1160_v4 }
 0x310   :  { %1163 = vrcp.f32 %v255_v5  ;;  %v210_v6 = vpop.f32.mrf.mxu2  ;;  %v267_v22 = vand.u32 2147483648, %v255_v5  ;;  %vm261_vm12 = vweird.f32 %v255_v5  ;;  %v265_v24 = vand.u32 2147483647, %v255_v5 }
 0x312   :  { %v268_v29 = vor.u32 1.1754944e-38, %v267_v22  ;;  %vm266_vm14 = vcmp.eq.f32.partialorder %v265_v24, 8.507059e+37 }
 0x313   :  { %v1162_v7 = vpop.eup %1161 }
 0x314   :  { %v216_v8 = vadd.f32 1.0, %v1162_v7 }
 0x316   :  { %v1164_v9 = vpop.eup %1163  ;;  %1165 = vrcp.f32 %v216_v8  ;;  %v228_v16 = vand.u32 2147483648, %v216_v8  ;;  %v226_v18 = vand.u32 2147483647, %v216_v8  ;;  %vm222_vm8 = vweird.f32 %v216_v8 }
 0x317   :  { %v257_v10 = vmul.f32 %v1164_v9, %v255_v5  ;;  %vm262_vm9 = vweird.f32 %v1164_v9 }
 0x318   :  { %v229_v21 = vor.u32 1.1754944e-38, %v228_v16  ;;  %vm227_vm11 = vcmp.eq.f32.partialorder %v226_v18, 8.507059e+37  ;;  %vm263_vm13 = vmor %vm261_vm12, %vm262_vm9 }
 0x319   :  { %v258_v11 = vsub.f32 1.0, %v257_v10 }
 0x31b   :  { %v259_v15 = vmul.f32 %v1164_v9, %v258_v11 }
 0x31c   :  { %v1166_v12 = vpop.eup %1165 }
 0x31d   :  { %v218_v13 = vmul.f32 %v1166_v12, %v216_v8  ;;  %vm223_vm7 = vweird.f32 %v1166_v12  ;;  %v260_v20 = vadd.f32 %v1164_v9, %v259_v15 }
 0x31e   :  { %vm224_vm10 = vmor %vm222_vm8, %vm223_vm7 }
 0x31f   :  { %v219_v14 = vsub.f32 1.0, %v218_v13  ;;  %v264_v28 = vsel %vm263_vm13, %v1164_v9, %v260_v20 }
 0x320   :  { %v269_v32 = vsel %vm266_vm14, %v268_v29, %v264_v28 }
 0x321   :  { %v220_v17 = vmul.f32 %v1166_v12, %v219_v14  ;;  %v271_v33 = vmul.f32 2.0, %v269_v32  ;;  %v273_v47 = vmul.f32 %v269_v32, %v1309_v25  ;;  %v63_v25 = vld [vmem:[%s1575_s0 + $0x10] sm:$0xff] }
 0x322   :  { %1091 = vmatmul.msk.f32.gmra.mxu0 %vm70_vm0, %v63_v25 }
 0x323   :  { %v221_v19 = vadd.f32 %v1166_v12, %v220_v17  ;;  %v1104_v35 = vadd.f32 -1.0, %v271_v33 }
 0x325   :  { %v225_v23 = vsel %vm224_vm10, %v1166_v12, %v221_v19 }
 0x326   :  { %v230_v26 = vsel %vm227_vm11, %v229_v21, %v225_v23 }
 0x327   :  { %v232_v27 = vmul.f32 2.0, %v230_v26  ;;  %v234_v42 = vmul.f32 0.0, %v230_v26 }
 0x329   :  { %v1102_v31 = vadd.f32 -1.0, %v232_v27 }
 0x32b   :  { %236 = vrot.lane.b32.xlu2 %v1102_v31, %s1280_s1 }
 0x333   :  { %275 = vrot.lane.b32.xlu2 %v1104_v35, %s1280_s1 }
 0x385   :  { %v237_v36 = vpop.permute.xlu2 %236 }
 0x386   :  { %v239_v39 = vmul.f32 %v237_v36, %v230_v26 }
 0x388   :  { %241 = vrot.lane.b32.xlu0 %v239_v39, %s1281_s18 }
 0x38d   :  { %v276_v40 = vpop.permute.xlu2 %275 }
 0x38e   :  { %v278_v41 = vmul.f32 %v276_v40, %v269_v32 }
 0x390   :  { %280 = vrot.lane.b32.xlu1 %v278_v41, %s1281_s18 }
 0x39f   :  { %v118_v0 = vpop.f32.mrf.mxu0 }
 0x3a0   :  { %v119_v4 = vadd.f32 %v1304_v3, %v118_v0 }
 0x3fa   :  { %v242_v45 = vpop.permute.xlu0 %241 }
 0x3fb   :  { %v1381_v46 = vadd.f32 %v242_v45, %v234_v42 }
 0x3fd   :  { %1167 = vtanh.f32 %v1381_v46 }
 0x402   :  { %v281_v48 = vpop.permute.xlu1 %280 }
 0x403   :  { %v1168_v49 = vpop.eup %1167  ;;  %v1385_v51 = vadd.f32 %v281_v48, %v273_v47 }
 0x404   :  { %247 = vrot.lane.b32.xlu2 %v1168_v49, %s1280_s1 }
 0x405   :  { %1169 = vtanh.f32 %v1385_v51 }
 0x40b   :  { %v1170_v53 = vpop.eup %1169 }
 0x40c   :  { %286 = vrot.lane.b32.xlu0 %v1170_v53, %s1280_s1 }
 0x45e   :  { %v248_v54 = vpop.permute.xlu2 %247 }
 0x45f   :  { %v250_v55 = vmul.f32 %v248_v54, %v230_v26 }
 0x461   :  { %295 = vrot.lane.b32.xlu2 %v250_v55, %s1280_s1 }
 0x47e   :  { %v287_v56 = vpop.permute.xlu0 %286 }
 0x47f   :  { %v289_v57 = vmul.f32 %v287_v56, %v269_v32 }
 0x481   :  { %291 = vrot.lane.b32.xlu1 %v289_v57, %s1281_s18 }
 0x4bb   :  { %v296_v58 = vpop.permute.xlu2 %295 }
 0x4f3   :  { %v292_v59 = vpop.permute.xlu1 %291 }
 0x4f4   :  { %v298_v60 = vsel %vm179_vm5, %v292_v59, %v296_v58 }
 0x4f5   :  { %v299_v61 = vpack.c.bf16 %v298_v60, %v298_v60 }
 0x4f7   :  { %1105 = vmatmul.msk.bf16.vlgmr.msra.gmra.mxu3 %vm182_vm6, %v299_v61  ;;  %1106 = vmatmul.msk.bf16.vlgmr.msrb.gmra.mxu1 %vm182_vm6, %v299_v61 }
 0x4f8   :  { %658 = vmatpush.bf16.msra.mxu3 %v1313_v30  ;;  %671 = vmatpush.bf16.msrb.mxu1 %v1315_v34 }
 0x4fc   :  { %659 = vmatpush.bf16.msra.mxu3 %v1318_v37  ;;  %672 = vmatpush.bf16.msrb.mxu1 %v1322_v38 }
 0x500   :  { %660 = vmatpush.bf16.msra.mxu3 %v1326_v43  ;;  %673 = vmatpush.bf16.msrb.mxu1 %v1330_v44 }
 0x504   :  { %661 = vmatpush.bf16.msra.mxu3 %v1338_v50  ;;  %674 = vmatpush.bf16.msrb.mxu1 %v1340_v52 }
 0x574   :  { %v325_v63 = vpop.f32.mrf.mxu1 }
 0x575   :  { %v329_v1 = vadd.f32 %v1374_v62, %v325_v63 }
 0x577   :  { %v1107_v2 = vmul.f32 -1.442695, %v329_v1 }
 0x579   :  { %1171 = vpow2.f32 %v1107_v2 }
 0x57a   :  { %v312_v5 = vpop.f32.mrf.mxu3 }
 0x57b   :  { %v368_v6 = vadd.f32 %v312_v5, %v119_v4 }
 0x57c   :  { %v327_v7 = vpop.f32.mrf.mxu1 }
 0x57d   :  { %v1109_v8 = vmul.f32 -1.442695, %v368_v6 }
 0x57f   :  { %v1172_v9 = vpop.eup %1171  ;;  %1173 = vpow2.f32 %v1109_v8 }
 0x580   :  { %v333_v10 = vadd.f32 1.0, %v1172_v9 }
 0x582   :  { %1175 = vrcp.f32 %v333_v10  ;;  %v314_v11 = vpop.f32.mrf.mxu3  ;;  %v345_v17 = vand.u32 2147483648, %v333_v10  ;;  %v343_v19 = vand.u32 2147483647, %v333_v10  ;;  %vm339_vm1 = vweird.f32 %v333_v10 }
 0x584   :  { %v346_v23 = vor.u32 1.1754944e-38, %v345_v17  ;;  %vm344_vm3 = vcmp.eq.f32.partialorder %v343_v19, 8.507059e+37 }
 0x585   :  { %v1174_v12 = vpop.eup %1173 }
 0x586   :  { %v372_v13 = vadd.f32 1.0, %v1174_v12 }
 0x588   :  { %v1176_v14 = vpop.eup %1175  ;;  %1177 = vrcp.f32 %v372_v13  ;;  %v384_v28 = vand.u32 2147483648, %v372_v13  ;;  %v382_v32 = vand.u32 2147483647, %v372_v13  ;;  %vm378_vm7 = vweird.f32 %v372_v13 }
 0x589   :  { %v335_v15 = vmul.f32 %v1176_v14, %v333_v10  ;;  %vm340_vm15 = vweird.f32 %v1176_v14 }
 0x58a   :  { %vm341_vm2 = vmor %vm339_vm1, %vm340_vm15  ;;  %v385_v36 = vor.u32 1.1754944e-38, %v384_v28  ;;  %vm383_vm9 = vcmp.eq.f32.partialorder %v382_v32, 8.507059e+37 }
 0x58b   :  { %v336_v16 = vsub.f32 1.0, %v335_v15 }
 0x58d   :  { %v337_v18 = vmul.f32 %v1176_v14, %v336_v16 }
 0x58e   :  { %v1178_v20 = vpop.eup %1177 }
 0x58f   :  { %v374_v21 = vmul.f32 %v1178_v20, %v372_v13  ;;  %v338_v22 = vadd.f32 %v1176_v14, %v337_v18  ;;  %vm379_vm4 = vweird.f32 %v1178_v20 }
 0x590   :  { %vm380_vm8 = vmor %vm378_vm7, %vm379_vm4 }
 0x591   :  { %v375_v24 = vsub.f32 1.0, %v374_v21  ;;  %v342_v26 = vsel %vm341_vm2, %v1176_v14, %v338_v22 }
 0x592   :  { %v347_v27 = vsel %vm344_vm3, %v346_v23, %v342_v26 }
 0x593   :  { %v349_v29 = vmul.f32 2.0, %v347_v27  ;;  %v376_v31 = vmul.f32 %v1178_v20, %v375_v24  ;;  %v351_v53 = vmul.f32 %v347_v27, %v1381_v46 }
 0x595   :  { %v1108_v33 = vadd.f32 -1.0, %v349_v29  ;;  %v377_v35 = vadd.f32 %v1178_v20, %v376_v31 }
 0x597   :  { %353 = vrot.lane.b32.xlu0 %v1108_v33, %s1280_s1  ;;  %v381_v39 = vsel %vm380_vm8, %v1178_v20, %v377_v35 }
 0x598   :  { %v386_v40 = vsel %vm383_vm9, %v385_v36, %v381_v39 }
 0x599   :  { %v388_v41 = vmul.f32 2.0, %v386_v40  ;;  %v390_v57 = vmul.f32 %v386_v40, %v1385_v51  ;;  %v64_v51 = vld [vmem:[%s1575_s0 + $0x18] sm:$0xff] }
 0x59a   :  { %1092 = vmatmul.msk.f32.gmra.mxu0 %vm70_vm0, %v64_v51 }
 0x59b   :  { %v1110_v42 = vadd.f32 -1.0, %v388_v41 }
 0x59d   :  { %392 = vrot.lane.b32.xlu1 %v1110_v42, %s1280_s1 }
 0x609   :  { %v354_v45 = vpop.permute.xlu0 %353 }
 0x60a   :  { %v356_v47 = vmul.f32 %v354_v45, %v347_v27 }
 0x60c   :  { %358 = vrot.lane.b32.xlu2 %v356_v47, %s1281_s18 }
 0x60f   :  { %v393_v48 = vpop.permute.xlu1 %392 }
 0x610   :  { %v395_v49 = vmul.f32 %v393_v48, %v386_v40 }
 0x612   :  { %397 = vrot.lane.b32.xlu0 %v395_v49, %s1281_s18 }
 0x617   :  { %v121_v5 = vpop.f32.mrf.mxu0 }
 0x618   :  { %v122_v6 = vadd.f32 %v1304_v3, %v121_v5 }
 0x666   :  { %v359_v54 = vpop.permute.xlu2 %358 }
 0x667   :  { %v1414_v55 = vadd.f32 %v359_v54, %v351_v53 }
 0x669   :  { %1179 = vtanh.f32 %v1414_v55 }
 0x66f   :  { %v1180_v56 = vpop.eup %1179 }
 0x670   :  { %364 = vrot.lane.b32.xlu1 %v1180_v56, %s1280_s1 }
 0x684   :  { %v398_v25 = vpop.permute.xlu0 %397 }
 0x685   :  { %v1419_v58 = vadd.f32 %v398_v25, %v390_v57 }
 0x687   :  { %1181 = vtanh.f32 %v1419_v58 }
 0x68d   :  { %v1182_v59 = vpop.eup %1181 }
 0x68e   :  { %403 = vrot.lane.b32.xlu2 %v1182_v59, %s1280_s1 }
 0x6e2   :  { %v365_v60 = vpop.permute.xlu1 %364 }
 0x6e3   :  { %v367_v46 = vmul.f32 %v365_v60, %v347_v27 }
 0x6e5   :  { %412 = vrot.lane.b32.xlu1 %v367_v46, %s1280_s1 }
 0x6e8   :  { %v404_v61 = vpop.permute.xlu2 %403 }
 0x6e9   :  { %v406_v63 = vmul.f32 %v404_v61, %v386_v40 }
 0x6eb   :  { %408 = vrot.lane.b32.xlu0 %v406_v63, %s1281_s18 }
 0x757   :  { %v413_v0 = vpop.permute.xlu1 %412 }
 0x75d   :  { %v409_v1 = vpop.permute.xlu0 %408 }
 0x75e   :  { %v415_v2 = vsel %vm179_vm5, %v409_v1, %v413_v0  ;;  %v65_v0 = vld [vmem:[%s1575_s0 + $0x20] sm:$0xff] }
 0x75f   :  { %v416_v4 = vpack.c.bf16 %v415_v2, %v415_v2  ;;  %1093 = vmatmul.msk.f32.gmra.mxu0 %vm70_vm0, %v65_v0 }
 0x761   :  { %1111 = vmatmul.msk.bf16.vlgmr.msrb.gmra.mxu2 %vm182_vm6, %v416_v4  ;;  %1112 = vmatmul.msk.bf16.vlgmr.msrb.gmra.mxu3 %vm182_vm6, %v416_v4 }
 0x762   :  { %788 = vmatpush.bf16.msrb.mxu3 %v1315_v34  ;;  %775 = vmatpush.bf16.msrb.mxu2 %v1313_v30 }
 0x766   :  { %789 = vmatpush.bf16.msrb.mxu3 %v1322_v38  ;;  %776 = vmatpush.bf16.msrb.mxu2 %v1318_v37 }
 0x76a   :  { %790 = vmatpush.bf16.msrb.mxu3 %v1330_v44  ;;  %777 = vmatpush.bf16.msrb.mxu2 %v1326_v43 }
 0x76e   :  { %791 = vmatpush.bf16.msrb.mxu3 %v1340_v52  ;;  %778 = vmatpush.bf16.msrb.mxu2 %v1338_v50 }
 0x7e4   :  { %v429_v7 = vpop.f32.mrf.mxu2  ;;  %v442_v8 = vpop.f32.mrf.mxu3 }
 0x7e5   :  { %v485_v9 = vadd.f32 %v429_v7, %v122_v6  ;;  %v446_v30 = vadd.f32 %v1374_v62, %v442_v8  ;;  %v124_v6 = vpop.f32.mrf.mxu0 }
 0x7e6   :  { %v125_v7 = vadd.f32 %v1304_v3, %v124_v6 }
 0x7e7   :  { %v1115_v10 = vmul.f32 -1.442695, %v485_v9  ;;  %v1113_v11 = vmul.f32 -1.442695, %v446_v30 }
 0x7e9   :  { %1183 = vpow2.f32 %v1115_v10 }
 0x7ea   :  { %1185 = vpow2.f32 %v1113_v11 }
 0x7ec   :  { %v431_v37 = vpop.f32.mrf.mxu2  ;;  %v444_v12 = vpop.f32.mrf.mxu3 }
 0x7ef   :  { %v1184_v13 = vpop.eup %1183 }
 0x7f0   :  { %v1186_v43 = vpop.eup %1185  ;;  %v489_v14 = vadd.f32 1.0, %v1184_v13 }
 0x7f1   :  { %v450_v15 = vadd.f32 1.0, %v1186_v43 }
 0x7f2   :  { %1187 = vrcp.f32 %v489_v14  ;;  %v501_v21 = vand.u32 2147483648, %v489_v14  ;;  %v499_v24 = vand.u32 2147483647, %v489_v14  ;;  %vm495_vm12 = vweird.f32 %v489_v14 }
 0x7f3   :  { %1189 = vrcp.f32 %v450_v15  ;;  %v462_v22 = vand.u32 2147483648, %v450_v15  ;;  %v460_v27 = vand.u32 2147483647, %v450_v15  ;;  %vm456_vm13 = vweird.f32 %v450_v15 }
 0x7f4   :  { %v502_v31 = vor.u32 1.1754944e-38, %v501_v21  ;;  %vm500_vm1 = vcmp.eq.f32.partialorder %v499_v24, 8.507059e+37 }
 0x7f5   :  { %v463_v32 = vor.u32 1.1754944e-38, %v462_v22  ;;  %vm461_vm2 = vcmp.eq.f32.partialorder %v460_v27, 8.507059e+37 }
 0x7f8   :  { %v1188_v50 = vpop.eup %1187 }
 0x7f9   :  { %v1190_v16 = vpop.eup %1189  ;;  %v491_v17 = vmul.f32 %v1188_v50, %v489_v14  ;;  %vm496_vm10 = vweird.f32 %v1188_v50 }
 0x7fa   :  { %v452_v18 = vmul.f32 %v1190_v16, %v450_v15  ;;  %vm457_vm11 = vweird.f32 %v1190_v16  ;;  %vm497_vm14 = vmor %vm495_vm12, %vm496_vm10 }
 0x7fb   :  { %v492_v19 = vsub.f32 1.0, %v491_v17  ;;  %vm458_vm15 = vmor %vm456_vm13, %vm457_vm11 }
 0x7fc   :  { %v453_v20 = vsub.f32 1.0, %v452_v18 }
 0x7fd   :  { %v493_v23 = vmul.f32 %v1188_v50, %v492_v19 }
 0x7fe   :  { %v454_v26 = vmul.f32 %v1190_v16, %v453_v20 }
 0x7ff   :  { %v494_v28 = vadd.f32 %v1188_v50, %v493_v23 }
 0x800   :  { %v455_v29 = vadd.f32 %v1190_v16, %v454_v26 }
 0x801   :  { %v498_v33 = vsel %vm497_vm14, %v1188_v50, %v494_v28 }
 0x802   :  { %v459_v35 = vsel %vm458_vm15, %v1190_v16, %v455_v29  ;;  %v503_v36 = vsel %vm500_vm1, %v502_v31, %v498_v33 }
 0x803   :  { %v464_v39 = vsel %vm461_vm2, %v463_v32, %v459_v35  ;;  %v505_v40 = vmul.f32 2.0, %v503_v36  ;;  %v507_v54 = vmul.f32 %v503_v36, %v1419_v58 }
 0x804   :  { %v466_v41 = vmul.f32 2.0, %v464_v39  ;;  %v468_v56 = vmul.f32 %v464_v39, %v1414_v55 }
 0x805   :  { %v1116_v42 = vadd.f32 -1.0, %v505_v40 }
 0x806   :  { %v1114_v45 = vadd.f32 -1.0, %v466_v41 }
 0x807   :  { %509 = vrot.lane.b32.xlu0 %v1116_v42, %s1280_s1 }
 0x808   :  { %470 = vrot.lane.b32.xlu2 %v1114_v45, %s1280_s1 }
 0x862   :  { %v471_v47 = vpop.permute.xlu2 %470 }
 0x863   :  { %v473_v48 = vmul.f32 %v471_v47, %v464_v39 }
 0x865   :  { %475 = vrot.lane.b32.xlu1 %v473_v48, %s1281_s18 }
 0x879   :  { %v510_v49 = vpop.permute.xlu0 %509 }
 0x87a   :  { %v512_v53 = vmul.f32 %v510_v49, %v503_v36 }
 0x87c   :  { %514 = vrot.lane.b32.xlu2 %v512_v53, %s1281_s18 }
 0x8d6   :  { %v515_v57 = vpop.permute.xlu2 %514 }
 0x8d7   :  { %v476_v25 = vpop.permute.xlu1 %475  ;;  %v1448_v59 = vadd.f32 %v515_v57, %v507_v54 }
 0x8d8   :  { %v1450_v60 = vadd.f32 %v476_v25, %v468_v56 }
 0x8d9   :  { %1191 = vtanh.f32 %v1448_v59 }
 0x8da   :  { %1193 = vtanh.f32 %v1450_v60 }
 0x8df   :  { %v1192_v46 = vpop.eup %1191 }
 0x8e0   :  { %v1194_v61 = vpop.eup %1193  ;;  %520 = vrot.lane.b32.xlu1 %v1192_v46, %s1280_s1 }
 0x8e1   :  { %481 = vrot.lane.b32.xlu0 %v1194_v61, %s1280_s1 }
 0x952   :  { %v521_v63 = vpop.permute.xlu1 %520 }
 0x953   :  { %v523_v58 = vmul.f32 %v521_v63, %v503_v36  ;;  %v482_v51 = vpop.permute.xlu0 %481 }
 0x954   :  { %v484_v55 = vmul.f32 %v482_v51, %v464_v39 }
 0x955   :  { %525 = vrot.lane.b32.xlu2 %v523_v58, %s1281_s18 }
 0x956   :  { %529 = vrot.lane.b32.xlu0 %v484_v55, %s1280_s1 }
 0x9af   :  { %v526_v1 = vpop.permute.xlu2 %525 }
 0x9c8   :  { %v530_v2 = vpop.permute.xlu0 %529 }
 0x9c9   :  { %v532_v4 = vsel %vm179_vm5, %v526_v1, %v530_v2 }
 0x9ca   :  { %v533_v5 = vpack.c.bf16 %v532_v4, %v532_v4 }
 0x9cc   :  { %1117 = vmatmul.msk.bf16.vlgmr.msra.gmra.mxu1 %vm182_vm6, %v533_v5  ;;  %1118 = vmatmul.msk.bf16.vlgmr.msra.gmra.mxu2 %vm182_vm6, %v533_v5 }
 0x9cd   :  { %905 = vmatpush.bf16.msra.mxu1 %v1315_v34  ;;  %1009 = vmatpush.bf16.msra.mxu2 %v1315_v34 }
 0x9d1   :  { %906 = vmatpush.bf16.msra.mxu1 %v1322_v38  ;;  %1010 = vmatpush.bf16.msra.mxu2 %v1322_v38 }
 0x9d5   :  { %907 = vmatpush.bf16.msra.mxu1 %v1330_v44  ;;  %1011 = vmatpush.bf16.msra.mxu2 %v1330_v44 }
 0x9d9   :  { %908 = vmatpush.bf16.msra.mxu1 %v1340_v52  ;;  %1012 = vmatpush.bf16.msra.mxu2 %v1340_v52 }
 0xa49   :  { %v546_v8 = vpop.f32.mrf.mxu1 }
 0xa4a   :  { %v602_v9 = vadd.f32 %v546_v8, %v125_v7 }
 0xa4c   :  { %v1121_v30 = vmul.f32 -1.442695, %v602_v9 }
 0xa4e   :  { %1195 = vpow2.f32 %v1121_v30 }
 0xa4f   :  { %v559_v34 = vpop.f32.mrf.mxu2 }
 0xa50   :  { %v563_v10 = vadd.f32 %v1374_v62, %v559_v34 }
 0xa51   :  { %v548_v11 = vpop.f32.mrf.mxu1 }
 0xa52   :  { %v1119_v38 = vmul.f32 -1.442695, %v563_v10 }
 0xa54   :  { %v1196_v37 = vpop.eup %1195  ;;  %1197 = vpow2.f32 %v1119_v38 }
 0xa55   :  { %v606_v12 = vadd.f32 1.0, %v1196_v37 }
 0xa57   :  { %1199 = vrcp.f32 %v606_v12  ;;  %v561_v44 = vpop.f32.mrf.mxu2  ;;  %v618_v50 = vand.u32 2147483648, %v606_v12  ;;  %v616_v17 = vand.u32 2147483647, %v606_v12  ;;  %vm612_vm4 = vweird.f32 %v606_v12 }
 0xa59   :  { %v619_v21 = vor.u32 1.1754944e-38, %v618_v50  ;;  %vm617_vm8 = vcmp.eq.f32.partialorder %v616_v17, 8.507059e+37 }
 0xa5a   :  { %v1198_v13 = vpop.eup %1197 }
 0xa5b   :  { %v567_v43 = vadd.f32 1.0, %v1198_v13 }
 0xa5d   :  { %v1200_v52 = vpop.eup %1199  ;;  %1201 = vrcp.f32 %v567_v43  ;;  %v579_v26 = vand.u32 2147483648, %v567_v43  ;;  %v577_v29 = vand.u32 2147483647, %v567_v43  ;;  %vm573_vm10 = vweird.f32 %v567_v43 }
 0xa5e   :  { %v608_v14 = vmul.f32 %v1200_v52, %v606_v12  ;;  %vm613_vm3 = vweird.f32 %v1200_v52 }
 0xa5f   :  { %vm614_vm7 = vmor %vm612_vm4, %vm613_vm3  ;;  %v580_v33 = vor.u32 1.1754944e-38, %v579_v26  ;;  %vm578_vm12 = vcmp.eq.f32.partialorder %v577_v29, 8.507059e+37 }
 0xa60   :  { %v609_v15 = vsub.f32 1.0, %v608_v14 }
 0xa62   :  { %v610_v16 = vmul.f32 %v1200_v52, %v609_v15 }
 0xa63   :  { %v1202_v18 = vpop.eup %1201 }
 0xa64   :  { %v569_v19 = vmul.f32 %v1202_v18, %v567_v43  ;;  %v611_v20 = vadd.f32 %v1200_v52, %v610_v16  ;;  %vm574_vm9 = vweird.f32 %v1202_v18 }
 0xa65   :  { %vm575_vm11 = vmor %vm573_vm10, %vm574_vm9 }
 0xa66   :  { %v570_v22 = vsub.f32 1.0, %v569_v19  ;;  %v615_v23 = vsel %vm614_vm7, %v1200_v52, %v611_v20 }
 0xa67   :  { %v620_v24 = vsel %vm617_vm8, %v619_v21, %v615_v23 }
 0xa68   :  { %v622_v27 = vmul.f32 2.0, %v620_v24  ;;  %v571_v28 = vmul.f32 %v1202_v18, %v570_v22  ;;  %v624_v48 = vmul.f32 %v620_v24, %v1448_v59 }
 0xa6a   :  { %v1122_v31 = vadd.f32 -1.0, %v622_v27  ;;  %v572_v32 = vadd.f32 %v1202_v18, %v571_v28 }
 0xa6c   :  { %626 = vrot.lane.b32.xlu2 %v1122_v31, %s1280_s1  ;;  %v576_v35 = vsel %vm575_vm11, %v1202_v18, %v572_v32 }
 0xa6d   :  { %v581_v36 = vsel %vm578_vm12, %v580_v33, %v576_v35 }
 0xa6e   :  { %v583_v39 = vmul.f32 2.0, %v581_v36  ;;  %v585_v56 = vmul.f32 %v581_v36, %v1450_v60  ;;  %v66_v60 = vld [vmem:[%s1575_s0 + $0x28] sm:$0xff] }
 0xa6f   :  { %1094 = vmatmul.msk.f32.gmra.mxu0 %vm70_vm0, %v66_v60 }
 0xa70   :  { %v1120_v40 = vadd.f32 -1.0, %v583_v39 }
 0xa72   :  { %587 = vrot.lane.b32.xlu1 %v1120_v40, %s1280_s1 }
 0xac6   :  { %v627_v41 = vpop.permute.xlu2 %626 }
 0xac7   :  { %v629_v42 = vmul.f32 %v627_v41, %v620_v24 }
 0xac9   :  { %631 = vrot.lane.b32.xlu1 %v629_v42, %s1281_s18 }
 0xae4   :  { %v588_v45 = vpop.permute.xlu1 %587 }
 0xae5   :  { %v590_v47 = vmul.f32 %v588_v45, %v581_v36 }
 0xae7   :  { %592 = vrot.lane.b32.xlu0 %v590_v47, %s1281_s18 }
 0xaec   :  { %v127_v4 = vpop.f32.mrf.mxu0 }
 0xaed   :  { %v128_v7 = vadd.f32 %v1304_v3, %v127_v4 }
 0xb3b   :  { %v632_v49 = vpop.permute.xlu1 %631 }
 0xb3c   :  { %v1480_v53 = vadd.f32 %v632_v49, %v624_v48 }
 0xb3e   :  { %1203 = vtanh.f32 %v1480_v53 }
 0xb44   :  { %v1204_v54 = vpop.eup %1203 }
 0xb45   :  { %637 = vrot.lane.b32.xlu0 %v1204_v54, %s1280_s1 }
 0xb59   :  { %v593_v57 = vpop.permute.xlu0 %592 }
 0xb5a   :  { %v1485_v25 = vadd.f32 %v593_v57, %v585_v56 }
 0xb5c   :  { %1205 = vtanh.f32 %v1485_v25 }
 0xb62   :  { %v1206_v46 = vpop.eup %1205 }
 0xb63   :  { %598 = vrot.lane.b32.xlu2 %v1206_v46, %s1280_s1 }
 0xbb7   :  { %v638_v61 = vpop.permute.xlu0 %637 }
 0xbb8   :  { %v640_v59 = vmul.f32 %v638_v61, %v620_v24 }
 0xbba   :  { %642 = vrot.lane.b32.xlu1 %v640_v59, %s1281_s18 }
 0xbbd   :  { %v599_v63 = vpop.permute.xlu2 %598 }
 0xbbe   :  { %v601_v58 = vmul.f32 %v599_v63, %v581_v36 }
 0xbc0   :  { %646 = vrot.lane.b32.xlu2 %v601_v58, %s1280_s1 }
 0xc1a   :  { %v647_v51 = vpop.permute.xlu2 %646 }
 0xc2c   :  { %v643_v55 = vpop.permute.xlu1 %642 }
 0xc2d   :  { %v649_v0 = vsel %vm179_vm5, %v643_v55, %v647_v51  ;;  %v1523_v55 = vld [vmem:[#allocation2 + $0x10] ss:$0 sm:$0xff] }
 0xc2e   :  { %v650_v1 = vpack.c.bf16 %v649_v0, %v649_v0 }
 0xc30   :  { %1123 = vmatmul.msk.bf16.vlgmr.msra.gmra.mxu3 %vm182_vm6, %v650_v1  ;;  %1124 = vmatmul.msk.bf16.vlgmr.msrb.gmra.mxu1 %vm182_vm6, %v650_v1 }
 0xcad   :  { %v676_v2 = vpop.f32.mrf.mxu1 }
 0xcae   :  { %v680_v5 = vadd.f32 %v1374_v62, %v676_v2 }
 0xcb0   :  { %v1125_v6 = vmul.f32 -1.442695, %v680_v5 }
 0xcb2   :  { %1207 = vpow2.f32 %v1125_v6 }
 0xcb3   :  { %v663_v8 = vpop.f32.mrf.mxu3 }
 0xcb4   :  { %v719_v9 = vadd.f32 %v663_v8, %v128_v7 }
 0xcb5   :  { %v678_v30 = vpop.f32.mrf.mxu1 }
 0xcb6   :  { %v1127_v34 = vmul.f32 -1.442695, %v719_v9 }
 0xcb8   :  { %v1208_v10 = vpop.eup %1207  ;;  %1209 = vpow2.f32 %v1127_v34 }
 0xcb9   :  { %v684_v11 = vadd.f32 1.0, %v1208_v10 }
 0xcbb   :  { %1211 = vrcp.f32 %v684_v11  ;;  %v665_v38 = vpop.f32.mrf.mxu3  ;;  %v696_v52 = vand.u32 2147483648, %v684_v11  ;;  %v694_v3 = vand.u32 2147483647, %v684_v11  ;;  %vm690_vm14 = vweird.f32 %v684_v11 }
 0xcbd   :  { %v697_v17 = vor.u32 1.1754944e-38, %v696_v52  ;;  %vm695_vm1 = vcmp.eq.f32.partialorder %v694_v3, 8.507059e+37 }
 0xcbe   :  { %v1210_v37 = vpop.eup %1209 }
 0xcbf   :  { %v723_v12 = vadd.f32 1.0, %v1210_v37 }
 0xcc1   :  { %v1212_v44 = vpop.eup %1211  ;;  %1213 = vrcp.f32 %v723_v12  ;;  %v735_v21 = vand.u32 2147483648, %v723_v12  ;;  %v733_v24 = vand.u32 2147483647, %v723_v12  ;;  %vm729_vm3 = vweird.f32 %v723_v12 }
 0xcc2   :  { %v686_v13 = vmul.f32 %v1212_v44, %v684_v11  ;;  %vm691_vm13 = vweird.f32 %v1212_v44 }
 0xcc3   :  { %vm692_vm15 = vmor %vm690_vm14, %vm691_vm13  ;;  %v736_v28 = vor.u32 1.1754944e-38, %v735_v21  ;;  %vm734_vm7 = vcmp.eq.f32.partialorder %v733_v24, 8.507059e+37 }
 0xcc4   :  { %v687_v43 = vsub.f32 1.0, %v686_v13 }
 0xcc6   :  { %v688_v14 = vmul.f32 %v1212_v44, %v687_v43 }
 0xcc7   :  { %v1214_v15 = vpop.eup %1213 }
 0xcc8   :  { %v725_v50 = vmul.f32 %v1214_v15, %v723_v12  ;;  %v689_v16 = vadd.f32 %v1212_v44, %v688_v14  ;;  %vm730_vm2 = vweird.f32 %v1214_v15 }
 0xcc9   :  { %vm731_vm4 = vmor %vm729_vm3, %vm730_vm2 }
 0xcca   :  { %v726_v18 = vsub.f32 1.0, %v725_v50  ;;  %v693_v19 = vsel %vm692_vm15, %v1212_v44, %v689_v16 }
 0xccb   :  { %v698_v20 = vsel %vm695_vm1, %v697_v17, %v693_v19 }
 0xccc   :  { %v700_v22 = vmul.f32 2.0, %v698_v20  ;;  %v727_v23 = vmul.f32 %v1214_v15, %v726_v18  ;;  %v702_v41 = vmul.f32 %v698_v20, %v1485_v25 }
 0xcce   :  { %v1126_v26 = vadd.f32 -1.0, %v700_v22  ;;  %v728_v27 = vadd.f32 %v1214_v15, %v727_v23 }
 0xcd0   :  { %704 = vrot.lane.b32.xlu0 %v1126_v26, %s1280_s1  ;;  %v732_v29 = vsel %vm731_vm4, %v1214_v15, %v728_v27 }
 0xcd1   :  { %v737_v31 = vsel %vm734_vm7, %v736_v28, %v732_v29 }
 0xcd2   :  { %v739_v32 = vmul.f32 2.0, %v737_v31  ;;  %v741_v48 = vmul.f32 %v737_v31, %v1480_v53  ;;  %v67_v53 = vld [vmem:[%s1575_s0 + $0x30] sm:$0xff] }
 0xcd3   :  { %1095 = vmatmul.msk.f32.gmra.mxu0 %vm70_vm0, %v67_v53 }
 0xcd4   :  { %v1128_v33 = vadd.f32 -1.0, %v739_v32 }
 0xcd6   :  { %743 = vrot.lane.b32.xlu1 %v1128_v33, %s1280_s1 }
 0xd42   :  { %v705_v35 = vpop.permute.xlu0 %704 }
 0xd43   :  { %v707_v36 = vmul.f32 %v705_v35, %v698_v20 }
 0xd45   :  { %709 = vrot.lane.b32.xlu2 %v707_v36, %s1281_s18 }
 0xd48   :  { %v744_v39 = vpop.permute.xlu1 %743 }
 0xd49   :  { %v746_v40 = vmul.f32 %v744_v39, %v737_v31 }
 0xd4b   :  { %748 = vrot.lane.b32.xlu0 %v746_v40, %s1281_s18 }
 0xd50   :  { %v130_v51 = vpop.f32.mrf.mxu0 }
 0xd51   :  { %v131_v0 = vadd.f32 %v1523_v55, %v130_v51 }
 0xd9f   :  { %v710_v42 = vpop.permute.xlu2 %709 }
 0xda0   :  { %v1505_v45 = vadd.f32 %v710_v42, %v702_v41 }
 0xda2   :  { %1215 = vtanh.f32 %v1505_v45 }
 0xda8   :  { %v1216_v47 = vpop.eup %1215 }
 0xda9   :  { %715 = vrot.lane.b32.xlu1 %v1216_v47, %s1280_s1 }
 0xdbd   :  { %v749_v49 = vpop.permute.xlu0 %748 }
 0xdbe   :  { %v1510_v54 = vadd.f32 %v749_v49, %v741_v48 }
 0xdc0   :  { %1217 = vtanh.f32 %v1510_v54 }
 0xdc6   :  { %v1218_v56 = vpop.eup %1217 }
 0xdc7   :  { %754 = vrot.lane.b32.xlu2 %v1218_v56, %s1280_s1 }
 0xe1b   :  { %v716_v57 = vpop.permute.xlu1 %715 }
 0xe1c   :  { %v718_v25 = vmul.f32 %v716_v57, %v698_v20  ;;  %v68_v57 = vld [vmem:[%s1575_s0 + $0x38] sm:$0xff] }
 0xe1d   :  { %1096 = vmatmul.msk.f32.gmra.mxu0 %vm70_vm0, %v68_v57 }
 0xe1e   :  { %763 = vrot.lane.b32.xlu1 %v718_v25, %s1280_s1 }
 0xe21   :  { %v755_v46 = vpop.permute.xlu2 %754 }
 0xe22   :  { %v757_v61 = vmul.f32 %v755_v46, %v737_v31 }
 0xe24   :  { %759 = vrot.lane.b32.xlu0 %v757_v61, %s1281_s18 }
 0xe90   :  { %v764_v59 = vpop.permute.xlu1 %763 }
 0xe96   :  { %v760_v63 = vpop.permute.xlu0 %759 }
 0xe97   :  { %v766_v58 = vsel %vm179_vm5, %v760_v63, %v764_v59 }
 0xe98   :  { %v767_v60 = vpack.c.bf16 %v766_v58, %v766_v58 }
 0xe9a   :  { %1129 = vmatmul.msk.bf16.vlgmr.msrb.gmra.mxu2 %vm182_vm6, %v767_v60  ;;  %1130 = vmatmul.msk.bf16.vlgmr.msrb.gmra.mxu3 %vm182_vm6, %v767_v60  ;;  %v133_v59 = vpop.f32.mrf.mxu0 }
 0xe9b   :  { %v134_v63 = vadd.f32 %v1523_v55, %v133_v59 }
 0xf1d   :  { %v780_v1 = vpop.f32.mrf.mxu2  ;;  %v793_v2 = vpop.f32.mrf.mxu3 }
 0xf1e   :  { %v836_v4 = vadd.f32 %v780_v1, %v131_v0  ;;  %v797_v5 = vadd.f32 %v1374_v62, %v793_v2  ;;  %v1551_v0 = vld [vmem:[#allocation2 + $0x18] ss:$0 sm:$0xff] }
 0xf20   :  { %v1133_v6 = vmul.f32 -1.442695, %v836_v4  ;;  %v1131_v7 = vmul.f32 -1.442695, %v797_v5 }
 0xf22   :  { %1219 = vpow2.f32 %v1133_v6 }
 0xf23   :  { %1221 = vpow2.f32 %v1131_v7 }
 0xf25   :  { %v782_v8 = vpop.f32.mrf.mxu2  ;;  %v795_v9 = vpop.f32.mrf.mxu3 }
 0xf28   :  { %v1220_v30 = vpop.eup %1219 }
 0xf29   :  { %v1222_v34 = vpop.eup %1221  ;;  %v840_v10 = vadd.f32 1.0, %v1220_v30 }
 0xf2a   :  { %v801_v11 = vadd.f32 1.0, %v1222_v34 }
 0xf2b   :  { %1223 = vrcp.f32 %v840_v10  ;;  %v852_v52 = vand.u32 2147483648, %v840_v10  ;;  %v850_v3 = vand.u32 2147483647, %v840_v10  ;;  %vm846_vm10 = vweird.f32 %v840_v10 }
 0xf2c   :  { %1225 = vrcp.f32 %v801_v11  ;;  %v813_v62 = vand.u32 2147483648, %v801_v11  ;;  %v811_v50 = vand.u32 2147483647, %v801_v11  ;;  %vm807_vm11 = vweird.f32 %v801_v11 }
 0xf2d   :  { %v853_v18 = vor.u32 1.1754944e-38, %v852_v52  ;;  %vm851_vm14 = vcmp.eq.f32.partialorder %v850_v3, 8.507059e+37 }
 0xf2e   :  { %v814_v19 = vor.u32 1.1754944e-38, %v813_v62  ;;  %vm812_vm15 = vcmp.eq.f32.partialorder %v811_v50, 8.507059e+37 }
 0xf31   :  { %v1224_v38 = vpop.eup %1223 }
 0xf32   :  { %v1226_v37 = vpop.eup %1225  ;;  %v842_v12 = vmul.f32 %v1224_v38, %v840_v10  ;;  %vm847_vm8 = vweird.f32 %v1224_v38 }
 0xf33   :  { %v803_v44 = vmul.f32 %v1226_v37, %v801_v11  ;;  %vm808_vm9 = vweird.f32 %v1226_v37  ;;  %vm848_vm12 = vmor %vm846_vm10, %vm847_vm8 }
 0xf34   :  { %v843_v13 = vsub.f32 1.0, %v842_v12  ;;  %vm809_vm13 = vmor %vm807_vm11, %vm808_vm9 }
 0xf35   :  { %v804_v43 = vsub.f32 1.0, %v803_v44 }
 0xf36   :  { %v844_v14 = vmul.f32 %v1224_v38, %v843_v13 }
 0xf37   :  { %v805_v15 = vmul.f32 %v1226_v37, %v804_v43 }
 0xf38   :  { %v845_v16 = vadd.f32 %v1224_v38, %v844_v14 }
 0xf39   :  { %v806_v17 = vadd.f32 %v1226_v37, %v805_v15 }
 0xf3a   :  { %v849_v20 = vsel %vm848_vm12, %v1224_v38, %v845_v16 }
 0xf3b   :  { %v810_v21 = vsel %vm809_vm13, %v1226_v37, %v806_v17  ;;  %v854_v22 = vsel %vm851_vm14, %v853_v18, %v849_v20 }
 0xf3c   :  { %v815_v23 = vsel %vm812_vm15, %v814_v19, %v810_v21  ;;  %v856_v24 = vmul.f32 2.0, %v854_v22  ;;  %v858_v35 = vmul.f32 %v854_v22, %v1510_v54 }
 0xf3d   :  { %v817_v26 = vmul.f32 2.0, %v815_v23  ;;  %v819_v36 = vmul.f32 %v815_v23, %v1505_v45 }
 0xf3e   :  { %v1134_v27 = vadd.f32 -1.0, %v856_v24 }
 0xf3f   :  { %v1132_v28 = vadd.f32 -1.0, %v817_v26 }
 0xf40   :  { %860 = vrot.lane.b32.xlu0 %v1134_v27, %s1280_s1 }
 0xf41   :  { %821 = vrot.lane.b32.xlu2 %v1132_v28, %s1280_s1 }
 0xf9b   :  { %v822_v29 = vpop.permute.xlu2 %821 }
 0xf9c   :  { %v824_v31 = vmul.f32 %v822_v29, %v815_v23 }
 0xf9e   :  { %826 = vrot.lane.b32.xlu1 %v824_v31, %s1281_s18 }
 0xfb2   :  { %v861_v32 = vpop.permute.xlu0 %860 }
 0xfb3   :  { %v863_v33 = vmul.f32 %v861_v32, %v854_v22 }
 0xfb5   :  { %865 = vrot.lane.b32.xlu2 %v863_v33, %s1281_s18 }
0x100f   :  { %v866_v39 = vpop.permute.xlu2 %865 }
0x1010   :  { %v827_v40 = vpop.permute.xlu1 %826  ;;  %v1533_v41 = vadd.f32 %v866_v39, %v858_v35 }
0x1011   :  { %v1535_v42 = vadd.f32 %v827_v40, %v819_v36 }
0x1012   :  { %1227 = vtanh.f32 %v1533_v41 }
0x1013   :  { %1229 = vtanh.f32 %v1535_v42 }
0x1018   :  { %v1228_v47 = vpop.eup %1227 }
0x1019   :  { %v1230_v48 = vpop.eup %1229  ;;  %871 = vrot.lane.b32.xlu1 %v1228_v47, %s1280_s1 }
0x101a   :  { %832 = vrot.lane.b32.xlu0 %v1230_v48, %s1280_s1 }
0x108b   :  { %v872_v49 = vpop.permute.xlu1 %871 }
0x108c   :  { %v874_v54 = vmul.f32 %v872_v49, %v854_v22  ;;  %v833_v56 = vpop.permute.xlu0 %832 }
0x108d   :  { %v835_v45 = vmul.f32 %v833_v56, %v815_v23 }
0x108e   :  { %876 = vrot.lane.b32.xlu2 %v874_v54, %s1281_s18 }
0x108f   :  { %880 = vrot.lane.b32.xlu0 %v835_v45, %s1280_s1 }
0x10e8   :  { %v877_v25 = vpop.permute.xlu2 %876 }
0x1101   :  { %v881_v46 = vpop.permute.xlu0 %880 }
0x1102   :  { %v883_v61 = vsel %vm179_vm5, %v877_v25, %v881_v46 }
0x1103   :  { %v884_v53 = vpack.c.bf16 %v883_v61, %v883_v61 }
0x1105   :  { %1135 = vmatmul.msk.bf16.vlgmr.msrb.gmra.mxu0 %vm182_vm6, %v884_v53  ;;  %1136 = vmatmul.msk.bf16.vlgmr.msra.gmra.mxu1 %vm182_vm6, %v884_v53 }
0x1182   :  { %v897_v58 = vpop.f32.mrf.mxu0  ;;  %v910_v60 = vpop.f32.mrf.mxu1 }
0x1183   :  { %v953_v51 = vadd.f32 %v897_v58, %v134_v63  ;;  %v914_v1 = vadd.f32 %v1551_v0, %v910_v60 }
0x1185   :  { %v1139_v2 = vmul.f32 -1.442695, %v953_v51  ;;  %v1137_v4 = vmul.f32 -1.442695, %v914_v1 }
0x1187   :  { %1231 = vpow2.f32 %v1139_v2 }
0x1188   :  { %1233 = vpow2.f32 %v1137_v4 }
0x118a   :  { %v899_v5 = vpop.f32.mrf.mxu0  ;;  %v912_v6 = vpop.f32.mrf.mxu1 }
0x118d   :  { %v1232_v7 = vpop.eup %1231 }
0x118e   :  { %v1234_v8 = vpop.eup %1233  ;;  %v957_v9 = vadd.f32 1.0, %v1232_v7 }
0x118f   :  { %v918_v30 = vadd.f32 1.0, %v1234_v8 }
0x1190   :  { %1235 = vrcp.f32 %v957_v9  ;;  %v969_v12 = vand.u32 2147483648, %v957_v9  ;;  %v967_v13 = vand.u32 2147483647, %v957_v9  ;;  %vm963_vm2 = vweird.f32 %v957_v9 }
0x1191   :  { %1237 = vrcp.f32 %v918_v30  ;;  %v930_v43 = vand.u32 2147483648, %v918_v30  ;;  %v928_v62 = vand.u32 2147483647, %v918_v30  ;;  %vm924_vm4 = vweird.f32 %v918_v30 }
0x1192   :  { %v970_v3 = vor.u32 1.1754944e-38, %v969_v12  ;;  %vm968_vm7 = vcmp.eq.f32.partialorder %v967_v13, 8.507059e+37  ;;  %v33_v12 = vld [vmem:[#allocation2 + $0x28] sm:$0xff] }
0x1193   :  { %v931_v16 = vor.u32 1.1754944e-38, %v930_v43  ;;  %vm929_vm9 = vcmp.eq.f32.partialorder %v928_v62, 8.507059e+37  ;;  %v1152_v62 = vld [vmem:[#allocation2 + $0x40] ss:$0 sm:$0xff] }
0x1196   :  { %v1236_v55 = vpop.eup %1235 }
0x1197   :  { %v1238_v34 = vpop.eup %1237  ;;  %v959_v10 = vmul.f32 %v1236_v55, %v957_v9  ;;  %vm964_vm0 = vweird.f32 %v1236_v55 }
0x1198   :  { %v920_v11 = vmul.f32 %v1238_v34, %v918_v30  ;;  %vm925_vm1 = vweird.f32 %v1238_v34  ;;  %vm965_vm3 = vmor %vm963_vm2, %vm964_vm0 }
0x1199   :  { %v960_v38 = vsub.f32 1.0, %v959_v10  ;;  %vm926_vm8 = vmor %vm924_vm4, %vm925_vm1 }
0x119a   :  { %v921_v37 = vsub.f32 1.0, %v920_v11 }
0x119b   :  { %v961_v44 = vmul.f32 %v1236_v55, %v960_v38  ;;  %v35_v38 = vld [vmem:[#allocation2 + $0x38] sm:$0xff] }
0x119c   :  { %v922_v52 = vmul.f32 %v1238_v34, %v921_v37  ;;  %v34_v37 = vld [vmem:[#allocation2 + $0x30] sm:$0xff]  ;;  %1075 = vmatpush.msra.mxu3 %v35_v38 }
0x119d   :  { %v962_v14 = vadd.f32 %v1236_v55, %v961_v44  ;;  %v32_v44 = vld [vmem:[#allocation2 + $0x20] sm:$0xff] }
0x119e   :  { %v923_v15 = vadd.f32 %v1238_v34, %v922_v52  ;;  %1076 = vmatpush.msra.mxu3 %v34_v37 }
0x119f   :  { %v966_v50 = vsel %vm965_vm3, %v1236_v55, %v962_v14 }
0x11a0   :  { %v971_v17 = vsel %vm968_vm7, %v970_v3, %v966_v50  ;;  %v927_v18 = vsel %vm926_vm8, %v1238_v34, %v923_v15  ;;  %1077 = vmatpush.msra.mxu3 %v33_v12 }
0x11a1   :  { %v973_v19 = vmul.f32 2.0, %v971_v17  ;;  %v932_v20 = vsel %vm929_vm9, %v931_v16, %v927_v18  ;;  %v975_v29 = vmul.f32 %v971_v17, %v1533_v41 }
0x11a2   :  { %v934_v21 = vmul.f32 2.0, %v932_v20  ;;  %v936_v35 = vmul.f32 %v932_v20, %v1535_v42  ;;  %1078 = vmatpush.msra.mxu3 %v32_v44 }
0x11a3   :  { %v1140_v22 = vadd.f32 -1.0, %v973_v19 }
0x11a4   :  { %v1138_v23 = vadd.f32 -1.0, %v934_v21 }
0x11a5   :  { %977 = vrot.lane.b32.xlu2 %v1140_v22, %s1280_s1 }
0x11a6   :  { %938 = vrot.lane.b32.xlu1 %v1138_v23, %s1280_s1 }
0x11ff   :  { %v978_v24 = vpop.permute.xlu2 %977 }
0x1200   :  { %v980_v26 = vmul.f32 %v978_v24, %v971_v17 }
0x1202   :  { %982 = vrot.lane.b32.xlu1 %v980_v26, %s1281_s18 }
0x1218   :  { %v939_v27 = vpop.permute.xlu1 %938 }
0x1219   :  { %v941_v28 = vmul.f32 %v939_v27, %v932_v20 }
0x121b   :  { %943 = vrot.lane.b32.xlu0 %v941_v28, %s1281_s18 }
0x1274   :  { %v983_v31 = vpop.permute.xlu1 %982 }
0x1275   :  { %v985_v32 = vadd.f32 %v983_v31, %v975_v29 }
0x1277   :  { %1239 = vtanh.f32 %v985_v32 }
0x127d   :  { %v1240_v33 = vpop.eup %1239 }
0x127e   :  { %988 = vrot.lane.b32.xlu0 %v1240_v33, %s1280_s1 }
0x128d   :  { %v944_v36 = vpop.permute.xlu0 %943 }
0x128e   :  { %v946_v39 = vadd.f32 %v944_v36, %v936_v35 }
0x1290   :  { %1241 = vtanh.f32 %v946_v39 }
0x1296   :  { %v1242_v40 = vpop.eup %1241 }
0x1297   :  { %949 = vrot.lane.b32.xlu2 %v1242_v40, %s1280_s1 }
0x12f0   :  { %v989_v47 = vpop.permute.xlu0 %988 }
0x12f1   :  { %v950_v48 = vpop.permute.xlu2 %949  ;;  %v991_v49 = vmul.f32 %v989_v47, %v971_v17 }
0x12f2   :  { %v952_v54 = vmul.f32 %v950_v48, %v932_v20 }
0x12f3   :  { %993 = vrot.lane.b32.xlu1 %v991_v49, %s1281_s18 }
0x12f4   :  { %997 = vrot.lane.b32.xlu2 %v952_v54, %s1280_s1 }
0x134e   :  { %v998_v41 = vpop.permute.xlu2 %997 }
0x1365   :  { %v994_v56 = vpop.permute.xlu1 %993 }
0x1366   :  { %v1000_v45 = vsel %vm179_vm5, %v994_v56, %v998_v41 }
0x1367   :  { %v1001_v57 = vpack.c.bf16 %v1000_v45, %v1000_v45 }
0x1369   :  { %1141 = vmatmul.msk.bf16.vlgmr.msra.gmra.mxu2 %vm182_vm6, %v1001_v57 }
0x13ec   :  { %v1014_v42 = vpop.f32.mrf.mxu2 }
0x13ed   :  { %v1018_v25 = vadd.f32 %v1551_v0, %v1014_v42 }
0x13ef   :  { %v1142_v46 = vmul.f32 -1.442695, %v1018_v25 }
0x13f1   :  { %1243 = vpow2.f32 %v1142_v46 }
0x13f4   :  { %v1016_v61 = vpop.f32.mrf.mxu2 }
0x13f7   :  { %v1244_v53 = vpop.eup %1243 }
0x13f8   :  { %v1022_v59 = vadd.f32 1.0, %v1244_v53 }
0x13fa   :  { %1245 = vrcp.f32 %v1022_v59  ;;  %v1034_v51 = vand.u32 2147483648, %v1022_v59  ;;  %v1032_v2 = vand.u32 2147483647, %v1022_v59  ;;  %vm1028_vm11 = vweird.f32 %v1022_v59 }
0x13fc   :  { %v1035_v5 = vor.u32 1.1754944e-38, %v1034_v51  ;;  %vm1033_vm6 = vcmp.eq.f32.partialorder %v1032_v2, 8.507059e+37 }
0x1400   :  { %v1246_v63 = vpop.eup %1245 }
0x1401   :  { %v1024_v58 = vmul.f32 %v1246_v63, %v1022_v59  ;;  %vm1029_vm10 = vweird.f32 %v1246_v63 }
0x1402   :  { %vm1030_vm12 = vmor %vm1028_vm11, %vm1029_vm10 }
0x1403   :  { %v1025_v60 = vsub.f32 1.0, %v1024_v58 }
0x1405   :  { %v1026_v1 = vmul.f32 %v1246_v63, %v1025_v60 }
0x1407   :  { %v1027_v4 = vadd.f32 %v1246_v63, %v1026_v1 }
0x1409   :  { %v1031_v6 = vsel %vm1030_vm12, %v1246_v63, %v1027_v4 }
0x140a   :  { %v1036_v0 = vsel %vm1033_vm6, %v1035_v5, %v1031_v6 }
0x140b   :  { %v1038_v7 = vmul.f32 2.0, %v1036_v0  ;;  %v1040_v55 = vmul.f32 %v1036_v0, %v946_v39 }
0x140d   :  { %v1143_v8 = vadd.f32 -1.0, %v1038_v7 }
0x140f   :  { %1042 = vrot.lane.b32.xlu0 %v1143_v8, %s1280_s1 }
0x1481   :  { %v1043_v9 = vpop.permute.xlu0 %1042 }
0x1482   :  { %v1045_v30 = vmul.f32 %v1043_v9, %v1036_v0 }
0x1484   :  { %1047 = vrot.lane.b32.xlu1 %v1045_v30, %s1281_s18 }
0x14f6   :  { %v1048_v34 = vpop.permute.xlu1 %1047 }
0x14f7   :  { %v1050_v10 = vadd.f32 %v1048_v34, %v1040_v55 }
0x14f9   :  { %1247 = vtanh.f32 %v1050_v10 }
0x14ff   :  { %v1248_v11 = vpop.eup %1247 }
0x1500   :  { %1053 = vrot.lane.b32.xlu2 %v1248_v11, %s1280_s1 }
0x155a   :  { %v1054_v13 = vpop.permute.xlu2 %1053 }
0x155b   :  { %v1056_v43 = vmul.f32 %v1054_v13, %v1036_v0 }
0x155d   :  { %1059 = vrot.lane.b32.xlu0 %v1056_v43, %s1281_s18 }
0x15cf   :  { %v1060_v52 = vpop.permute.xlu0 %1059 }
0x15d0   :  { %1144 = vmatmul.msk.f32.vlgmr.msra.gmra.mxu3 %vm179_vm5, %v1060_v52 }
0x1653   :  { %v1080_v14 = vpop.f32.mrf.mxu3 }
0x1654   :  { %v1081_v3 = vadd.f32 %v1152_v62, %v1080_v14 }
0x1656   :  { %1083 = vst [vmem:[%s1577_s2] sm:$0xff] %v1081_v3 }
0x1657   :  { %1088 = vsyncpa [#allocation3], 1 }

</bundles_post_ra>
